<compile_context>
chip_gen: v6e
topology: v6e:2x2x1
jax: 0.10.0
libtpu: 0.0.40
codegen_flags: <defaults>
</compile_context>

<pallas_src>
import jax
import jax.numpy as jnp
from jax import lax
from jax.experimental import pallas as pl
from jax.experimental.pallas import tpu as pltpu

_SPAD = 64      # lanes reserved per sample inside a pool-position block (P=49 -> 64)
_CLS_PAD = 128  # lane-dense logits slab width


# ------------------------- layout helpers (traced under jit) ---------------- #

def _im2col(x, K):
    """x: (N, C, H, W) -> patches (N, OH, OW, C*K*K) in (c, kh, kw) order."""
    N, C, H, W = x.shape
    OH, OW = H - K + 1, W - K + 1
    cols = []
    for kh in range(K):
        for kw in range(K):
            cols.append(x[:, :, kh:kh + OH, kw:kw + OW])     # (N, C, OH, OW)
    p = jnp.stack(cols, axis=2)                              # (N, C, K*K, OH, OW)
    p = p.reshape(N, C * K * K, OH, OW)
    return p.transpose(0, 2, 3, 1)                           # (N, OH, OW, C*K*K)


def _build_patchesT(x, K, PH, PW):
    """Transposed im2col RHS: (CKK, 4 * N * _SPAD).

    Block b (b = 2*i + j, N*_SPAD lanes wide) holds the patches feeding conv
    output (2r+i, 2c+j).  Lane index within a block = n*_SPAD + r*PW + c; the
    lanes [n*_SPAD + PH*PW, (n+1)*_SPAD) are zero so every sample sits at a
    64-lane-aligned offset -> the in-kernel flatten copies become constant
    half-vreg moves instead of unaligned 49-lane slices.
    """
    N, C, H, W = x.shape
    CKK = C * K * K
    P = PH * PW
    patches = _im2col(x, K)                                   # (N, OH, OW, CKK)
    blocks = []
    for i in (0, 1):
        for j in (0, 1):
            sub = patches[:, i::2, j::2, :][:, :PH, :PW, :]   # (N, PH, PW, CKK)
            sub = sub.reshape(N, P, CKK)
            sub = jnp.pad(sub, ((0, 0), (0, _SPAD - P), (0, 0)))
            blocks.append(sub.reshape(N * _SPAD, CKK).T)      # (CKK, N*_SPAD)
    return jnp.concatenate(blocks, axis=1)                    # (CKK, 4*N*_SPAD)


# ------------------------------ fused forward ------------------------------- #

@jax.jit
def classification_cnn_forward(x, params):
    """Fused inference forward (eval-mode BatchNorm folded into fc1; dropout=id)."""
    N, C, H, W = x.shape
    F = params["w_conv"].shape[0]
    K = params["w_conv"].shape[2]
    OH = H - K + 1
    PH = PW = OH // 2
    P = PH * PW
    CKK = C * K * K
    Hd = params["w1"].shape[0]
    ncls = params["w2"].shape[0]
    assert params["w1"].shape[1] == F * P
    assert P <= _SPAD and ncls <= _CLS_PAD
    BW = N * _SPAD                      # lane width of one pool-position block
    # TODO(synk): toy-size kernel (N=2). For real batches tile N onto a leading
    # "parallel" grid axis (feeds v7x's second TensorCore) and grow the fc1 LHS
    # rows toward the MXU height instead of this single-block layout.

    # All prep below is fused by XLA with the pallas_call launch (same jit).
    pT = _build_patchesT(x, K, PH, PW)                        # (CKK, 4*BW)
    w_mat = params["w_conv"].reshape(F, CKK)                  # (F, CKK)
    b_col = params["b_conv"].reshape(F, 1)                    # (F, 1)

    # Fold eval-mode BatchNorm1d into fc1 and re-lay w1 rows to the padded
    # (f, s) column layout used by flat_scr; the pad rows are zero so the
    # relu(b_conv) values living in the pad lanes never leak into fc1.
    scale = params["bn_gamma"] / jnp.sqrt(params["bn_var"] + params["bn_eps"])
    shift = params["bn_beta"] - params["bn_mean"] * scale
    w1t = params["w1"].T.reshape(F, P, Hd)
    w1t = jnp.pad(w1t, ((0, 0), (0, _SPAD - P), (0, 0)))      # (F, _SPAD, Hd)
    w1bn = (w1t * scale[None, None, :]).reshape(F * _SPAD, Hd)
    b1bn = (params["b1"] * scale + shift).reshape(1, Hd)
    w2t = jnp.pad(params["w2"].T, ((0, 0), (0, _CLS_PAD - ncls)))        # (Hd, 128)
    b2p = jnp.pad(params["b2"].reshape(1, ncls), ((0, 0), (0, _CLS_PAD - ncls)))

    def fused_kernel(pT_ref, wc_ref, bc_ref, w1_ref, b1_ref, w2_ref, b2_ref,
                     out_ref, flat_scr):
        # conv as ONE matmul: filters on sublanes, the four 2x2-pool positions
        # in four aligned BW-lane blocks of the lane dimension.
        conv = jnp.dot(wc_ref[...], pT_ref[...],
                       preferred_element_type=jnp.float32,
                       precision=lax.Precision.HIGHEST)       # (F, 4*BW)
        conv = jnp.maximum(conv + bc_ref[...], 0.0)           # bias + ReLU
        # 2x2 max pool == elementwise max of the four lane blocks.
        pooled = jnp.maximum(
            jnp.maximum(conv[:, 0 * BW:1 * BW], conv[:, 1 * BW:2 * BW]),
            jnp.maximum(conv[:, 2 * BW:3 * BW], conv[:, 3 * BW:4 * BW]))  # (F, BW)
        # PyTorch x.view(N, -1) flatten (to the padded (f, s) column layout
        # matched by w1_ref): each copy is a 64-lane half-vreg with a constant
        # 0/64 lane shift; `pooled` stays a value (no scratch round-trip) and
        # one row slice per filter feeds both per-sample stores.
        for f in range(F):
            row = pooled[f:f + 1, :]                          # (1, BW) value
            for n in range(N):
                flat_scr[pl.ds(n, 1), pl.ds(f * _SPAD, _SPAD)] = \
                    row[:, n * _SPAD:(n + 1) * _SPAD]
        # fc1 (+ folded eval-mode BatchNorm) -> ReLU -> dropout(=id) -> fc2.
        h = jnp.dot(flat_scr[...], w1_ref[...],
                    preferred_element_type=jnp.float32,
                    precision=lax.Precision.HIGHEST) + b1_ref[...]
        h = jnp.maximum(h, 0.0)
        out_ref[...] = jnp.dot(h, w2_ref[...],
                               preferred_element_type=jnp.float32,
                               precision=lax.Precision.HIGHEST) + b2_ref[...]

    full = lambda shape: pl.BlockSpec(shape, lambda i: (0,) * len(shape))
    out_padded = pl.pallas_call(
        fused_kernel,
        out_shape=jax.ShapeDtypeStruct((N, _CLS_PAD), jnp.float32),
        grid=(1,),
        in_specs=[full((CKK, 4 * BW)), full((F, CKK)), full((F, 1)),
                  full((F * _SPAD, Hd)), full((1, Hd)),
                  full((Hd, _CLS_PAD)), full((1, _CLS_PAD))],
        out_specs=full((N, _CLS_PAD)),
        scratch_shapes=[pltpu.VMEM((N, F * _SPAD), jnp.float32)],
        compiler_params=pltpu.CompilerParams(
            dimension_semantics=("arbitrary",)),
        # Resident VMEM footprint ~150 KB: no vmem_limit_bytes needed on
        # v5e/v6e (128 MiB) or v7x (64 MiB).
    )(pT, w_mat, b_col, w1bn, b1bn, w2t, b2p)
    return out_padded[:, :ncls]   # slice the lane-dense slab back to logits


# ---------------------------------- main ------------------------------------ #

if __name__ == "__main__":
    # Small shapes consistent with the module: input_dim=(4,16,16),
    # num_filters=8, kernel_size=3, hidden_dim=32, num_classes=2, batch=2.
    N, C, H, W = 2, 4, 16, 16
    F_, K, Hd, ncls = 8, 3, 32, 2

    key = jax.random.PRNGKey(0)
    k_x, k_wc, k_w1, k_w2 = jax.random.split(key, 4)
    x = jax.random.normal(k_x, (N, C, H, W), jnp.float32)

    def xavier_uniform(k, shape, fan_in, fan_out):
        bound = (6.0 / (fan_in + fan_out)) ** 0.5
        return jax.random.uniform(k, shape, jnp.float32, -bound, bound)

    OH = (H - K) + 1
    PH = OH // 2
    Dflat = PH * PH * F_

    params = dict(
        w_conv=xavier_uniform(k_wc, (F_, C, K, K), C * K * K, F_ * K * K),
        b_conv=jnp.zeros((F_,), jnp.float32),
        w1=xavier_uniform(k_w1, (Hd, Dflat), Dflat, Hd),
        b1=jnp.zeros((Hd,), jnp.float32),
        w2=xavier_uniform(k_w2, (ncls, Hd), Hd, ncls),
        b2=jnp.zeros((ncls,), jnp.float32),
        bn_gamma=jnp.ones((Hd,), jnp.float32),
        bn_beta=jnp.zeros((Hd,), jnp.float32),
        bn_mean=jnp.zeros((Hd,), jnp.float32),
        bn_var=jnp.ones((Hd,), jnp.float32),
        bn_eps=1e-5,
    )

    logits = classification_cnn_forward(x, params)
    logits = jax.block_until_ready(logits)
    assert logits.shape == (N, ncls)

    # Pure-JAX reference (full f32 precision) for correctness.
    ref_c = lax.conv_general_dilated(
        x, params["w_conv"], (1, 1), "VALID",
        dimension_numbers=("NCHW", "OIHW", "NCHW"),
        precision=lax.Precision.HIGHEST)
    ref_c = jnp.maximum(ref_c + params["b_conv"].reshape(1, -1, 1, 1), 0.0)
    ref_p = lax.reduce_window(ref_c, -jnp.inf, lax.max,
                              (1, 1, 2, 2), (1, 1, 2, 2), "VALID")
    ref_flat = ref_p.reshape(N, -1)
    ref_h = jnp.dot(ref_flat, params["w1"].T,
                    precision=lax.Precision.HIGHEST) + params["b1"]
    ref_h = (ref_h - params["bn_mean"]) / jnp.sqrt(params["bn_var"] + params["bn_eps"])
    ref_h = jnp.maximum(ref_h * params["bn_gamma"] + params["bn_beta"], 0.0)
    ref_out = jnp.dot(ref_h, params["w2"].T,
                      precision=lax.Precision.HIGHEST) + params["b2"]

    # Kernel matmuls run at HIGHEST precision with f32 accumulation -> tight tol.
    assert jnp.allclose(logits, ref_out, atol=1e-4, rtol=1e-4), (logits, ref_out)
    print("KERNEL_OK")
</pallas_src>

<mosaic_0001>
module attributes {stable_mosaic.version = 11 : i64} {
  func.func @fused_kernel(%arg0: i32, %arg1: memref<36x512xf32, #tpu.memory_space<vmem>>, %arg2: memref<8x36xf32, #tpu.memory_space<vmem>>, %arg3: memref<8x1xf32, #tpu.memory_space<vmem>>, %arg4: memref<512x32xf32, #tpu.memory_space<vmem>>, %arg5: memref<1x32xf32, #tpu.memory_space<vmem>>, %arg6: memref<32x128xf32, #tpu.memory_space<vmem>>, %arg7: memref<1x128xf32, #tpu.memory_space<vmem>>, %arg8: memref<2x128xf32, #tpu.memory_space<vmem>>, %arg9: memref<2x512xf32, #tpu.memory_space<vmem>>) attributes {dimension_semantics = [#tpu.dimension_semantics<arbitrary>], iteration_bounds = array<i64: 1>, scalar_prefetch = 0 : i64, scratch_operands = 1 : i64, tpu.core_type = #tpu.core_type<tc>, window_params = [{pipeline_mode = #tpu.pipeline_mode<synchronous>, transform_indices = @transform_0, window_bounds = array<i64: 36, 512>}, {pipeline_mode = #tpu.pipeline_mode<synchronous>, transform_indices = @transform_1, window_bounds = array<i64: 8, 36>}, {pipeline_mode = #tpu.pipeline_mode<synchronous>, transform_indices = @transform_2, window_bounds = array<i64: 8, 1>}, {pipeline_mode = #tpu.pipeline_mode<synchronous>, transform_indices = @transform_3, window_bounds = array<i64: 512, 32>}, {pipeline_mode = #tpu.pipeline_mode<synchronous>, transform_indices = @transform_4, window_bounds = array<i64: 1, 32>}, {pipeline_mode = #tpu.pipeline_mode<synchronous>, transform_indices = @transform_5, window_bounds = array<i64: 32, 128>}, {pipeline_mode = #tpu.pipeline_mode<synchronous>, transform_indices = @transform_6, window_bounds = array<i64: 1, 128>}, {pipeline_mode = #tpu.pipeline_mode<synchronous>, transform_indices = @transform_7, window_bounds = array<i64: 2, 128>}]} {
    %c0 = arith.constant 0 : index
    %c0_0 = arith.constant 0 : index
    %0 = vector.load %arg2[%c0, %c0_0] : memref<8x36xf32, #tpu.memory_space<vmem>>, vector<8x36xf32>
    %c0_1 = arith.constant 0 : index
    %c0_2 = arith.constant 0 : index
    %1 = vector.load %arg1[%c0_1, %c0_2] : memref<36x512xf32, #tpu.memory_space<vmem>>, vector<36x512xf32>
    %cst = arith.constant dense<0.000000e+00> : vector<8x512xf32>
    %2 = tpu.matmul %0, %1, %cst {dimension_numbers = #tpu.dot_dimension_numbers<[1], [0], [0], [1], [0, 0, 1, 1], [], []>, precision = #tpu.contract_precision<fp32>} : vector<8x36xf32>, vector<36x512xf32>, vector<8x512xf32> -> vector<8x512xf32>
    %c0_3 = arith.constant 0 : index
    %c0_4 = arith.constant 0 : index
    %3 = vector.load %arg3[%c0_3, %c0_4] : memref<8x1xf32, #tpu.memory_space<vmem>>, vector<8x1xf32>
    %4 = vector.broadcast %3 : vector<8x1xf32> to vector<8x512xf32>
    %5 = arith.addf %2, %4 : vector<8x512xf32>
    %cst_5 = arith.constant 0.000000e+00 : f32
    %6 = vector.broadcast %cst_5 : f32 to vector<8x512xf32>
    %7 = arith.maximumf %5, %6 : vector<8x512xf32>
    %8 = vector.extract_strided_slice %7 {offsets = [0, 0], sizes = [8, 128], strides = [1, 1]} : vector<8x512xf32> to vector<8x128xf32>
    %9 = vector.extract_strided_slice %7 {offsets = [0, 128], sizes = [8, 128], strides = [1, 1]} : vector<8x512xf32> to vector<8x128xf32>
    %10 = arith.maximumf %8, %9 : vector<8x128xf32>
    %11 = vector.extract_strided_slice %7 {offsets = [0, 256], sizes = [8, 128], strides = [1, 1]} : vector<8x512xf32> to vector<8x128xf32>
    %12 = vector.extract_strided_slice %7 {offsets = [0, 384], sizes = [8, 128], strides = [1, 1]} : vector<8x512xf32> to vector<8x128xf32>
    %13 = arith.maximumf %11, %12 : vector<8x128xf32>
    %14 = arith.maximumf %10, %13 : vector<8x128xf32>
    %15 = vector.extract_strided_slice %14 {offsets = [0, 0], sizes = [1, 128], strides = [1, 1]} : vector<8x128xf32> to vector<1x128xf32>
    %16 = vector.extract_strided_slice %15 {offsets = [0, 0], sizes = [1, 64], strides = [1, 1]} : vector<1x128xf32> to vector<1x64xf32>
    %c0_6 = arith.constant 0 : index
    %c0_7 = arith.constant 0 : index
    %17 = vector.load %arg9[%c0_6, %c0_7] : memref<2x512xf32, #tpu.memory_space<vmem>>, vector<1x64xf32>
    tpu.vector_store %arg9[%c0_6, %c0_7], %16 {strides = array<i32>} : memref<2x512xf32, #tpu.memory_space<vmem>>, vector<1x64xf32>,
    %18 = vector.extract_strided_slice %15 {offsets = [0, 64], sizes = [1, 64], strides = [1, 1]} : vector<1x128xf32> to vector<1x64xf32>
    %c1 = arith.constant 1 : index
    %c0_8 = arith.constant 0 : index
    %19 = vector.load %arg9[%c1, %c0_8] : memref<2x512xf32, #tpu.memory_space<vmem>>, vector<1x64xf32>
    tpu.vector_store %arg9[%c1, %c0_8], %18 {strides = array<i32>} : memref<2x512xf32, #tpu.memory_space<vmem>>, vector<1x64xf32>,
    %20 = vector.extract_strided_slice %14 {offsets = [1, 0], sizes = [1, 128], strides = [1, 1]} : vector<8x128xf32> to vector<1x128xf32>
    %21 = vector.extract_strided_slice %20 {offsets = [0, 0], sizes = [1, 64], strides = [1, 1]} : vector<1x128xf32> to vector<1x64xf32>
    %c0_9 = arith.constant 0 : index
    %c64 = arith.constant 64 : index
    %22 = vector.load %arg9[%c0_9, %c64] : memref<2x512xf32, #tpu.memory_space<vmem>>, vector<1x64xf32>
    tpu.vector_store %arg9[%c0_9, %c64], %21 {strides = array<i32>} : memref<2x512xf32, #tpu.memory_space<vmem>>, vector<1x64xf32>,
    %23 = vector.extract_strided_slice %20 {offsets = [0, 64], sizes = [1, 64], strides = [1, 1]} : vector<1x128xf32> to vector<1x64xf32>
    %c1_10 = arith.constant 1 : index
    %c64_11 = arith.constant 64 : index
    %24 = vector.load %arg9[%c1_10, %c64_11] : memref<2x512xf32, #tpu.memory_space<vmem>>, vector<1x64xf32>
    tpu.vector_store %arg9[%c1_10, %c64_11], %23 {strides = array<i32>} : memref<2x512xf32, #tpu.memory_space<vmem>>, vector<1x64xf32>,
    %25 = vector.extract_strided_slice %14 {offsets = [2, 0], sizes = [1, 128], strides = [1, 1]} : vector<8x128xf32> to vector<1x128xf32>
    %26 = vector.extract_strided_slice %25 {offsets = [0, 0], sizes = [1, 64], strides = [1, 1]} : vector<1x128xf32> to vector<1x64xf32>
    %c0_12 = arith.constant 0 : index
    %c128 = arith.constant 128 : index
    %27 = vector.load %arg9[%c0_12, %c128] : memref<2x512xf32, #tpu.memory_space<vmem>>, vector<1x64xf32>
    tpu.vector_store %arg9[%c0_12, %c128], %26 {strides = array<i32>} : memref<2x512xf32, #tpu.memory_space<vmem>>, vector<1x64xf32>,
    %28 = vector.extract_strided_slice %25 {offsets = [0, 64], sizes = [1, 64], strides = [1, 1]} : vector<1x128xf32> to vector<1x64xf32>
    %c1_13 = arith.constant 1 : index
    %c128_14 = arith.constant 128 : index
    %29 = vector.load %arg9[%c1_13, %c128_14] : memref<2x512xf32, #tpu.memory_space<vmem>>, vector<1x64xf32>
    tpu.vector_store %arg9[%c1_13, %c128_14], %28 {strides = array<i32>} : memref<2x512xf32, #tpu.memory_space<vmem>>, vector<1x64xf32>,
    %30 = vector.extract_strided_slice %14 {offsets = [3, 0], sizes = [1, 128], strides = [1, 1]} : vector<8x128xf32> to vector<1x128xf32>
    %31 = vector.extract_strided_slice %30 {offsets = [0, 0], sizes = [1, 64], strides = [1, 1]} : vector<1x128xf32> to vector<1x64xf32>
    %c0_15 = arith.constant 0 : index
    %c192 = arith.constant 192 : index
    %32 = vector.load %arg9[%c0_15, %c192] : memref<2x512xf32, #tpu.memory_space<vmem>>, vector<1x64xf32>
    tpu.vector_store %arg9[%c0_15, %c192], %31 {strides = array<i32>} : memref<2x512xf32, #tpu.memory_space<vmem>>, vector<1x64xf32>,
    %33 = vector.extract_strided_slice %30 {offsets = [0, 64], sizes = [1, 64], strides = [1, 1]} : vector<1x128xf32> to vector<1x64xf32>
    %c1_16 = arith.constant 1 : index
    %c192_17 = arith.constant 192 : index
    %34 = vector.load %arg9[%c1_16, %c192_17] : memref<2x512xf32, #tpu.memory_space<vmem>>, vector<1x64xf32>
    tpu.vector_store %arg9[%c1_16, %c192_17], %33 {strides = array<i32>} : memref<2x512xf32, #tpu.memory_space<vmem>>, vector<1x64xf32>,
    %35 = vector.extract_strided_slice %14 {offsets = [4, 0], sizes = [1, 128], strides = [1, 1]} : vector<8x128xf32> to vector<1x128xf32>
    %36 = vector.extract_strided_slice %35 {offsets = [0, 0], sizes = [1, 64], strides = [1, 1]} : vector<1x128xf32> to vector<1x64xf32>
    %c0_18 = arith.constant 0 : index
    %c256 = arith.constant 256 : index
    %37 = vector.load %arg9[%c0_18, %c256] : memref<2x512xf32, #tpu.memory_space<vmem>>, vector<1x64xf32>
    tpu.vector_store %arg9[%c0_18, %c256], %36 {strides = array<i32>} : memref<2x512xf32, #tpu.memory_space<vmem>>, vector<1x64xf32>,
    %38 = vector.extract_strided_slice %35 {offsets = [0, 64], sizes = [1, 64], strides = [1, 1]} : vector<1x128xf32> to vector<1x64xf32>
    %c1_19 = arith.constant 1 : index
    %c256_20 = arith.constant 256 : index
    %39 = vector.load %arg9[%c1_19, %c256_20] : memref<2x512xf32, #tpu.memory_space<vmem>>, vector<1x64xf32>
    tpu.vector_store %arg9[%c1_19, %c256_20], %38 {strides = array<i32>} : memref<2x512xf32, #tpu.memory_space<vmem>>, vector<1x64xf32>,
    %40 = vector.extract_strided_slice %14 {offsets = [5, 0], sizes = [1, 128], strides = [1, 1]} : vector<8x128xf32> to vector<1x128xf32>
    %41 = vector.extract_strided_slice %40 {offsets = [0, 0], sizes = [1, 64], strides = [1, 1]} : vector<1x128xf32> to vector<1x64xf32>
    %c0_21 = arith.constant 0 : index
    %c320 = arith.constant 320 : index
    %42 = vector.load %arg9[%c0_21, %c320] : memref<2x512xf32, #tpu.memory_space<vmem>>, vector<1x64xf32>
    tpu.vector_store %arg9[%c0_21, %c320], %41 {strides = array<i32>} : memref<2x512xf32, #tpu.memory_space<vmem>>, vector<1x64xf32>,
    %43 = vector.extract_strided_slice %40 {offsets = [0, 64], sizes = [1, 64], strides = [1, 1]} : vector<1x128xf32> to vector<1x64xf32>
    %c1_22 = arith.constant 1 : index
    %c320_23 = arith.constant 320 : index
    %44 = vector.load %arg9[%c1_22, %c320_23] : memref<2x512xf32, #tpu.memory_space<vmem>>, vector<1x64xf32>
    tpu.vector_store %arg9[%c1_22, %c320_23], %43 {strides = array<i32>} : memref<2x512xf32, #tpu.memory_space<vmem>>, vector<1x64xf32>,
    %45 = vector.extract_strided_slice %14 {offsets = [6, 0], sizes = [1, 128], strides = [1, 1]} : vector<8x128xf32> to vector<1x128xf32>
    %46 = vector.extract_strided_slice %45 {offsets = [0, 0], sizes = [1, 64], strides = [1, 1]} : vector<1x128xf32> to vector<1x64xf32>
    %c0_24 = arith.constant 0 : index
    %c384 = arith.constant 384 : index
    %47 = vector.load %arg9[%c0_24, %c384] : memref<2x512xf32, #tpu.memory_space<vmem>>, vector<1x64xf32>
    tpu.vector_store %arg9[%c0_24, %c384], %46 {strides = array<i32>} : memref<2x512xf32, #tpu.memory_space<vmem>>, vector<1x64xf32>,
    %48 = vector.extract_strided_slice %45 {offsets = [0, 64], sizes = [1, 64], strides = [1, 1]} : vector<1x128xf32> to vector<1x64xf32>
    %c1_25 = arith.constant 1 : index
    %c384_26 = arith.constant 384 : index
    %49 = vector.load %arg9[%c1_25, %c384_26] : memref<2x512xf32, #tpu.memory_space<vmem>>, vector<1x64xf32>
    tpu.vector_store %arg9[%c1_25, %c384_26], %48 {strides = array<i32>} : memref<2x512xf32, #tpu.memory_space<vmem>>, vector<1x64xf32>,
    %50 = vector.extract_strided_slice %14 {offsets = [7, 0], sizes = [1, 128], strides = [1, 1]} : vector<8x128xf32> to vector<1x128xf32>
    %51 = vector.extract_strided_slice %50 {offsets = [0, 0], sizes = [1, 64], strides = [1, 1]} : vector<1x128xf32> to vector<1x64xf32>
    %c0_27 = arith.constant 0 : index
    %c448 = arith.constant 448 : index
    %52 = vector.load %arg9[%c0_27, %c448] : memref<2x512xf32, #tpu.memory_space<vmem>>, vector<1x64xf32>
    tpu.vector_store %arg9[%c0_27, %c448], %51 {strides = array<i32>} : memref<2x512xf32, #tpu.memory_space<vmem>>, vector<1x64xf32>,
    %53 = vector.extract_strided_slice %50 {offsets = [0, 64], sizes = [1, 64], strides = [1, 1]} : vector<1x128xf32> to vector<1x64xf32>
    %c1_28 = arith.constant 1 : index
    %c448_29 = arith.constant 448 : index
    %54 = vector.load %arg9[%c1_28, %c448_29] : memref<2x512xf32, #tpu.memory_space<vmem>>, vector<1x64xf32>
    tpu.vector_store %arg9[%c1_28, %c448_29], %53 {strides = array<i32>} : memref<2x512xf32, #tpu.memory_space<vmem>>, vector<1x64xf32>,
    %c0_30 = arith.constant 0 : index
    %c0_31 = arith.constant 0 : index
    %55 = vector.load %arg9[%c0_30, %c0_31] : memref<2x512xf32, #tpu.memory_space<vmem>>, vector<2x512xf32>
    %c0_32 = arith.constant 0 : index
    %c0_33 = arith.constant 0 : index
    %56 = vector.load %arg4[%c0_32, %c0_33] : memref<512x32xf32, #tpu.memory_space<vmem>>, vector<512x32xf32>
    %cst_34 = arith.constant dense<0.000000e+00> : vector<2x32xf32>
    %57 = tpu.matmul %55, %56, %cst_34 {dimension_numbers = #tpu.dot_dimension_numbers<[1], [0], [0], [1], [0, 0, 1, 1], [], []>, precision = #tpu.contract_precision<fp32>} : vector<2x512xf32>, vector<512x32xf32>, vector<2x32xf32> -> vector<2x32xf32>
    %c0_35 = arith.constant 0 : index
    %c0_36 = arith.constant 0 : index
    %58 = vector.load %arg5[%c0_35, %c0_36] : memref<1x32xf32, #tpu.memory_space<vmem>>, vector<1x32xf32>
    %59 = vector.broadcast %58 : vector<1x32xf32> to vector<2x32xf32>
    %60 = arith.addf %57, %59 : vector<2x32xf32>
    %cst_37 = arith.constant 0.000000e+00 : f32
    %61 = vector.broadcast %cst_37 : f32 to vector<2x32xf32>
    %62 = arith.maximumf %60, %61 : vector<2x32xf32>
    %c0_38 = arith.constant 0 : index
    %c0_39 = arith.constant 0 : index
    %63 = vector.load %arg6[%c0_38, %c0_39] : memref<32x128xf32, #tpu.memory_space<vmem>>, vector<32x128xf32>
    %cst_40 = arith.constant dense<0.000000e+00> : vector<2x128xf32>
    %64 = tpu.matmul %62, %63, %cst_40 {dimension_numbers = #tpu.dot_dimension_numbers<[1], [0], [0], [1], [0, 0, 1, 1], [], []>, precision = #tpu.contract_precision<fp32>} : vector<2x32xf32>, vector<32x128xf32>, vector<2x128xf32> -> vector<2x128xf32>
    %c0_41 = arith.constant 0 : index
    %c0_42 = arith.constant 0 : index
    %65 = vector.load %arg7[%c0_41, %c0_42] : memref<1x128xf32, #tpu.memory_space<vmem>>, vector<1x128xf32>
    %66 = vector.broadcast %65 : vector<1x128xf32> to vector<2x128xf32>
    %67 = arith.addf %64, %66 : vector<2x128xf32>
    %c0_43 = arith.constant 0 : index
    %c0_44 = arith.constant 0 : index
    %68 = vector.load %arg8[%c0_43, %c0_44] : memref<2x128xf32, #tpu.memory_space<vmem>>, vector<2x128xf32>
    tpu.vector_store %arg8[%c0_43, %c0_44], %67 {strides = array<i32>} : memref<2x128xf32, #tpu.memory_space<vmem>>, vector<2x128xf32>,
    return
  }
  func.func @transform_0(%arg0: i32) -> (i32, i32) {
    %c0_i32 = arith.constant 0 : i32
    %c0_i32_0 = arith.constant 0 : i32
    %c0_i32_1 = arith.constant 0 : i32
    return %c0_i32, %c0_i32_0 : i32, i32
  }
  func.func @transform_1(%arg0: i32) -> (i32, i32) {
    %c0_i32 = arith.constant 0 : i32
    %c0_i32_0 = arith.constant 0 : i32
    %c0_i32_1 = arith.constant 0 : i32
    return %c0_i32, %c0_i32_0 : i32, i32
  }
  func.func @transform_2(%arg0: i32) -> (i32, i32) {
    %c0_i32 = arith.constant 0 : i32
    %c0_i32_0 = arith.constant 0 : i32
    %c0_i32_1 = arith.constant 0 : i32
    return %c0_i32, %c0_i32_0 : i32, i32
  }
  func.func @transform_3(%arg0: i32) -> (i32, i32) {
    %c0_i32 = arith.constant 0 : i32
    %c0_i32_0 = arith.constant 0 : i32
    %c0_i32_1 = arith.constant 0 : i32
    return %c0_i32, %c0_i32_0 : i32, i32
  }
  func.func @transform_4(%arg0: i32) -> (i32, i32) {
    %c0_i32 = arith.constant 0 : i32
    %c0_i32_0 = arith.constant 0 : i32
    %c0_i32_1 = arith.constant 0 : i32
    return %c0_i32, %c0_i32_0 : i32, i32
  }
  func.func @transform_5(%arg0: i32) -> (i32, i32) {
    %c0_i32 = arith.constant 0 : i32
    %c0_i32_0 = arith.constant 0 : i32
    %c0_i32_1 = arith.constant 0 : i32
    return %c0_i32, %c0_i32_0 : i32, i32
  }
  func.func @transform_6(%arg0: i32) -> (i32, i32) {
    %c0_i32 = arith.constant 0 : i32
    %c0_i32_0 = arith.constant 0 : i32
    %c0_i32_1 = arith.constant 0 : i32
    return %c0_i32, %c0_i32_0 : i32, i32
  }
  func.func @transform_7(%arg0: i32) -> (i32, i32) {
    %c0_i32 = arith.constant 0 : i32
    %c0_i32_0 = arith.constant 0 : i32
    %c0_i32_1 = arith.constant 0 : i32
    return %c0_i32, %c0_i32_0 : i32, i32
  }
}

</mosaic_0001>

<bundles_post_ra>
// kernel: classification_cnn_forward.1
= control target key start
LH: loop header
LB: loop body
LE: loop exit
PB: predicated region body
PF: predicated region fallthrough
CT: control target
= control target key end

     0   :  { %vm58_vm0 = vcmask 1043456   ;;  %v6063_v24 = vmov 0.0   ;;  %vm54_vm1 = vcmask 293888   ;;  %s6055_s0 = inlined_call_operand.vmem [shape: f32[36,512], index: 0, kind: input, shape index: {}]   ;;  %s6056_s1 = inlined_call_operand.vmem [shape: f32[8,36], index: 1, kind: input, shape index: {}]   ;;  %s6057_s2 = inlined_call_operand.vmem [shape: f32[8,1], index: 2, kind: input, shape index: {}]   ;;  %s6058_s3 = inlined_call_operand.vmem [shape: f32[512,32], index: 3, kind: input, shape index: {}]   ;;  %s6059_s4 = inlined_call_operand.vmem [shape: f32[1,32], index: 4, kind: input, shape index: {}]   ;;  %s6060_s5 = inlined_call_operand.vmem [shape: f32[32,128], index: 5, kind: input, shape index: {}]   ;;  %s6061_s6 = inlined_call_operand.vmem [shape: f32[1,128], index: 6, kind: input, shape index: {}]   ;;  %s6062_s7 = inlined_call_operand.hbm [shape: f32[2,128], index: 7, kind: output, shape index: {}]  }
   0x1   :  { %v45_v0 = vld [vmem:[%s6055_s0 + $0x88] sm:$0xf]  ;;  %v44_v1 = vld [vmem:[%s6055_s0 + $0x80] sm:$0xf]  ;;  %145 = vmatprep.mubr.f32.mxu0 %v6063_v24  ;;  %271 = vmatprep.mubr.f32.mxu1 %v6063_v24 }
   0x2   :  { %v41_v2 = vld [vmem:[%s6055_s0 + $0x68] sm:$0xff]  ;;  %v63_v3 = vsel %vm58_vm0, %v45_v0, 0  ;;  %v60_v4 = vsel %vm58_vm0, %v44_v1, 0  ;;  %v40_v6 = vld [vmem:[%s6055_s0 + $0x60] sm:$0xff] }
   0x3   :  { %v4230_v5 = vand.u32 4294901760, %v41_v2  ;;  %v37_v7 = vld [vmem:[%s6055_s0 + $0x48] sm:$0xff]  ;;  %v36_v8 = vld [vmem:[%s6055_s0 + $0x40] sm:$0xff]  ;;  %v4241_v9 = vand.u32 4294901760, %v63_v3  ;;  %v4243_v10 = vand.u32 4294901760, %v60_v4  ;;  %v4245_v11 = vand.u32 4294901760, %v40_v6 }
   0x4   :  { %v4247_v12 = vand.u32 4294901760, %v37_v7  ;;  %v33_v13 = vld [vmem:[%s6055_s0 + $0x28] sm:$0xff]  ;;  %v32_v14 = vld [vmem:[%s6055_s0 + $0x20] sm:$0xff]  ;;  %v4255_v15 = vand.u32 4294901760, %v36_v8 }
   0x5   :  { %v4257_v16 = vand.u32 4294901760, %v33_v13  ;;  %v4259_v17 = vand.u32 4294901760, %v32_v14  ;;  %v29_v18 = vld [vmem:[%s6055_s0 + $0x8] sm:$0xff]  ;;  %v28_v19 = vld [vmem:[%s6055_s0] sm:$0xff]  ;;  %94 = vmatprep.subr.mxu0 %v4241_v9  ;;  %v4271_v21 = vsub.f32 %v63_v3, %v4241_v9  ;;  %v4276_v23 = vsub.f32 %v60_v4, %v4243_v10 }
   0x6   :  { %v4268_v20 = vand.u32 4294901760, %v29_v18  ;;  %v4273_v22 = vand.u32 4294901760, %v28_v19  ;;  %v27_v25 = vld [vmem:[%s6056_s1] sm:$0xff]  ;;  %96 = vmatpush1.msra.mxu0 %v4243_v10  ;;  %v4284_v26 = vsub.f32 %v41_v2, %v4230_v5  ;;  %v4287_v27 = vsub.f32 %v40_v6, %v4245_v11 }
   0x7   :  { %v4290_v28 = vsub.f32 %v37_v7, %v4247_v12  ;;  %98 = vmatprep.subr.mxu0 %v4230_v5  ;;  %v181_v29 = vand.u32 4294901760, %v4271_v21  ;;  %v187_v30 = vand.u32 4294901760, %v4276_v23  ;;  %v56_v31 = vsel %vm54_vm1, %v27_v25, 0 }
   0x8   :  { %v4297_v32 = vsub.f32 %v36_v8, %v4255_v15  ;;  %100 = vmatpush1.msra.mxu0 %v4245_v11  ;;  %v193_v33 = vand.u32 4294901760, %v4284_v26  ;;  %v4301_v34 = vand.u32 4294901760, %v56_v31  ;;  %v199_v35 = vand.u32 4294901760, %v4287_v27 }
   0x9   :  { %v205_v36 = vand.u32 4294901760, %v4290_v28  ;;  %102 = vmatprep.subr.mxu0 %v4247_v12  ;;  %v182_v37 = vsub.f32 %v4271_v21, %v181_v29  ;;  %v188_v38 = vsub.f32 %v4276_v23, %v187_v30  ;;  %v4314_v40 = vsub.f32 %v33_v13, %v4257_v16 }
   0xa   :  { %v211_v39 = vand.u32 4294901760, %v4297_v32 }
   0xb   :  { %12 = vsyncpa [#allocation4], 0  ;;  %104 = vmatpush1.msra.mxu0 %v4255_v15  ;;  %v194_v41 = vsub.f32 %v4284_v26, %v193_v33  ;;  %v4321_v42 = vsub.f32 %v56_v31, %v4301_v34  ;;  %v200_v43 = vsub.f32 %v4287_v27, %v199_v35  ;;  %v206_v44 = vsub.f32 %v4290_v28, %v205_v36  ;;  %v47_v7 = vld [vmem:[%s6055_s0 + $0x98] sm:$0xf]  ;;  %v46_v8 = vld [vmem:[%s6055_s0 + $0x90] sm:$0xf] }
   0xc   :  { %106 = vmatprep.subr.mxu0 %v4257_v16  ;;  %v183_v45 = vand.u32 4294901760, %v182_v37  ;;  %v189_v46 = vand.u32 4294901760, %v188_v38  ;;  %v212_v47 = vsub.f32 %v4297_v32, %v211_v39  ;;  %v217_v48 = vand.u32 4294901760, %v4314_v40  ;;  %s4176_s9 = smov 64   ;;  %s4178_s26 = smov [#allocation3]  }
   0xd   :  { %108 = vmatpush1.msra.mxu0 %v4259_v17  ;;  %v195_v49 = vand.u32 4294901760, %v194_v41  ;;  %v4336_v50 = vand.u32 4294901760, %v4321_v42  ;;  %v201_v51 = vand.u32 4294901760, %v200_v43  ;;  %v207_v52 = vand.u32 4294901760, %v206_v44  ;;  %s3617_s27 = sshll.u32 %s4178_s26, 4  ;;  %s3618_s27 = int_to_ptr.vmem [resolvable:$true] %s3617_s27 }
   0xe   :  { %110 = vmatprep.subr.mxu0 %v4268_v20  ;;  %184 = vmatprep.subr.mxu1 %v183_v45  ;;  %v218_v53 = vsub.f32 %v4314_v40, %v217_v48  ;;  %v4343_v54 = vsub.f32 %v32_v14, %v4259_v17  ;;  %v4346_v55 = vsub.f32 %v29_v18, %v4268_v20  ;;  %v213_v57 = vand.u32 4294901760, %v212_v47  ;;  %v43_v18 = vld [vmem:[%s6055_s0 + $0x78] sm:$0xff]  ;;  %s4151_s28 = scalar_lea.vmem %s3618_s27, 32  ;;  %p4156_p1 = scmp.lt.s32.totalorder %s3618_s27, %s3618_s27 }
   0xf   :  { %112 = vmatpush1.msra.mxu0 %v4273_v22  ;;  %190 = vmatpush1.msra.mxu1 %v189_v46  ;;  %v149_v56 = vsub.f32 %v4321_v42, %v4336_v50  ;;  %v4352_v58 = vsub.f32 %v28_v19, %v4273_v22  ;;  %v69_v13 = vsel %vm58_vm0, %v47_v7, 0  ;;  %v66_v14 = vsel %vm58_vm0, %v46_v8, 0  ;;  %p4152_p0 = scmp.ne.s32.totalorder %s3618_s27, %s4151_s28  ;;  %p4157_p2 = scmp.lt.s32.totalorder %s4151_s28, %s4151_s28 }
  0x10   :  { %196 = vmatprep.subr.mxu1 %v195_v49  ;;  %303 = vmatprep.subr.mxu0 %v4271_v21  ;;  %v219_v59 = vand.u32 4294901760, %v218_v53  ;;  %v223_v60 = vand.u32 4294901760, %v4343_v54  ;;  %v229_v61 = vand.u32 4294901760, %v4346_v55  ;;  %v4401_v19 = vand.u32 4294901760, %v69_v13  ;;  %v42_v21 = vld [vmem:[%s6055_s0 + $0x70] sm:$0xff] }
  0x11   :  { %v4357_v62 = vand.u32 4294901760, %v149_v56  ;;  %202 = vmatpush1.msra.mxu1 %v201_v51  ;;  %v235_v63 = vand.u32 4294901760, %v4352_v58  ;;  %v4406_v25 = vand.u32 4294901760, %v66_v14  ;;  %vm1216_vm2 = vcmask 516096   ;;  %p4158_p3 = por %p4157_p2, %p4156_p1 }
  0x12   :  { %208 = vmatprep.subr.mxu1 %v207_v52  ;;  %v224_v0 = vsub.f32 %v4343_v54, %v223_v60  ;;  %v230_v1 = vsub.f32 %v4346_v55, %v229_v61  ;;  %v4434_v31 = vsub.f32 %v69_v13, %v4401_v19  ;;  %vm1235_vm3 = vcmask 1040896  }
  0x13   :  { %151 = vmatmul.mubr.f32.vlgmr.msra.gmra.mxu0 %v4357_v62  ;;  %214 = vmatpush1.msra.mxu1 %v213_v57  ;;  %v236_v2 = vsub.f32 %v4352_v58, %v235_v63  ;;  %vm4177_vm4 = vmmov 0   ;;  %vm3121_vm5 = vcmask 261120   ;;  %p4159_p4 = pnand %p4158_p3, %p4152_p0 }
  0x14   :  { %306 = vmatpush1.msra.mxu0 %v4276_v23  ;;  %220 = vmatprep.subr.mxu1 %v219_v59  ;;  %v225_v3 = vand.u32 4294901760, %v224_v0  ;;  %v231_v4 = vand.u32 4294901760, %v230_v1  ;;  %v4414_v23 = vand.u32 4294901760, %v43_v18  ;;  %v750_v43 = vand.u32 4294901760, %v4434_v31 }
  0x15   :  { %309 = vmatprep.subr.mxu0 %v4284_v26  ;;  %v237_v6 = vand.u32 4294901760, %v236_v2  ;;  %363 = vmatprep.mubr.f32.mxu0 %v6063_v24  ;;  %v38_v26 = vld [vmem:[%s6055_s0 + $0x50] sm:$0xff] }
  0x16   :  { %312 = vmatpush1.msra.mxu0 %v4287_v27  ;;  %226 = vmatpush1.msra.mxu1 %v225_v3  ;;  %v4428_v27 = vand.u32 4294901760, %v42_v21  ;;  %v4455_v37 = vsub.f32 %v43_v18, %v4414_v23  ;;  %v751_v51 = vsub.f32 %v4434_v31, %v750_v43  ;;  %v1322_v18 = vld [vmem:[%s6058_s3 + $0xf0] sm:$0xff] }
  0x17   :  { %315 = vmatprep.subr.mxu0 %v4290_v28  ;;  %232 = vmatprep.subr.mxu1 %v231_v4  ;;  %v4440_v28 = vsub.f32 %v66_v14, %v4406_v25  ;;  %v1307_v14 = vld [vmem:[%s6058_s3 + $0x78] sm:$0xff] }
  0x18   :  { %318 = vmatpush1.msra.mxu0 %v4297_v32  ;;  %238 = vmatpush1.msra.mxu1 %v237_v6  ;;  %v34_v32 = vld [vmem:[%s6055_s0 + $0x30] sm:$0xff] }
  0x19   :  { %321 = vmatprep.subr.mxu0 %v4314_v40  ;;  %273 = vmatmul.mubr.f32.vlgmr.msra.gmra.mxu1 %v4301_v34  ;;  %v4469_v40 = vsub.f32 %v42_v21, %v4428_v27  ;;  %v4471_v41 = vand.u32 4294901760, %v34_v32  ;;  %v756_v45 = vand.u32 4294901760, %v4440_v28  ;;  %v4638_v21 = vand.u32 4294901760, %v1322_v18 }
  0x1a   :  { %324 = vmatpush1.msra.mxu0 %v4343_v54  ;;  %395 = vmatprep.subr.mxu1 %v4241_v9 }
  0x1b   :  { %327 = vmatprep.subr.mxu0 %v4346_v55  ;;  %397 = vmatpush1.msra.mxu1 %v4243_v10  ;;  %v768_v52 = vand.u32 4294901760, %v4469_v40 }
  0x1c   :  { %330 = vmatpush1.msra.mxu0 %v4352_v58  ;;  %399 = vmatprep.subr.mxu1 %v4230_v5 }
  0x1d   :  { %366 = vmatmul.mubr.f32.vlgmr.msra.gmra.mxu0 %v4321_v42  ;;  %481 = vmatprep.subr.mxu0 %v181_v29  ;;  %v39_v29 = vld [vmem:[%s6055_s0 + $0x58] sm:$0xff]  ;;  %v769_v57 = vsub.f32 %v4469_v40, %v768_v52 }
  0x1e   :  { %401 = vmatpush1.msra.mxu1 %v4245_v11  ;;  %485 = vmatpush1.msra.mxu0 %v187_v30  ;;  %v35_v30 = vld [vmem:[%s6055_s0 + $0x38] sm:$0xff] }
  0x1f   :  { %403 = vmatprep.subr.mxu1 %v4247_v12  ;;  %489 = vmatprep.subr.mxu0 %v193_v33  ;;  %v4442_v33 = vand.u32 4294901760, %v39_v29  ;;  %v4460_v38 = vand.u32 4294901760, %v35_v30 }
  0x20   :  { %405 = vmatpush1.msra.mxu1 %v4255_v15  ;;  %493 = vmatpush1.msra.mxu0 %v199_v35  ;;  %v4449_v35 = vand.u32 4294901760, %v38_v26 }
  0x21   :  { %407 = vmatprep.subr.mxu1 %v4257_v16  ;;  %497 = vmatprep.subr.mxu0 %v205_v36  ;;  %v31_v36 = vld [vmem:[%s6055_s0 + $0x18] sm:$0xff]  ;;  %v4481_v46 = vsub.f32 %v39_v29, %v4442_v33  ;;  %v4494_v49 = vsub.f32 %v35_v30, %v4460_v38 }
  0x22   :  { %409 = vmatpush1.msra.mxu1 %v4259_v17  ;;  %501 = vmatpush1.msra.mxu0 %v211_v39  ;;  %v30_v39 = vld [vmem:[%s6055_s0 + $0x10] sm:$0xff]  ;;  %v4477_v44 = vand.u32 4294901760, %v31_v36 }
  0x23   :  { %411 = vmatprep.subr.mxu1 %v4268_v20  ;;  %505 = vmatprep.subr.mxu0 %v217_v48  ;;  %v4488_v47 = vand.u32 4294901760, %v30_v39  ;;  %v762_v48 = vand.u32 4294901760, %v4455_v37  ;;  %v786_v56 = vand.u32 4294901760, %v4494_v49 }
  0x24   :  { %413 = vmatpush1.msra.mxu1 %v4273_v22  ;;  %446 = vmatprep.mubr.f32.mxu1 %v6063_v24  ;;  %v4512_v53 = vsub.f32 %v31_v36, %v4477_v44 }
  0x25   :  { %509 = vmatpush1.msra.mxu0 %v223_v60  ;;  %450 = vmatmul.mubr.f32.vlgmr.msra.gmra.mxu1 %v4336_v50  ;;  %v4517_v54 = vsub.f32 %v30_v39, %v4488_v47 }
  0x26   :  { %513 = vmatprep.subr.mxu0 %v229_v61  ;;  %581 = vmatprep.subr.mxu1 %v4241_v9  ;;  %v4486_v9 = vsub.f32 %v38_v26, %v4449_v35 }
  0x27   :  { %517 = vmatpush1.msra.mxu0 %v235_v63  ;;  %550 = vmatprep.mubr.f32.mxu0 %v6063_v24  ;;  %v787_v63 = vsub.f32 %v4494_v49, %v786_v56 }
  0x28   :  { %583 = vmatpush1.msra.mxu1 %v4243_v10  ;;  %552 = vmatmul.mubr.f32.vlgmr.msra.gmra.mxu0 %v4301_v34  ;;  %v4499_v10 = vsub.f32 %v34_v32, %v4471_v41  ;;  %v780_v55 = vand.u32 4294901760, %v4486_v9 }
  0x29   :  { %585 = vmatprep.subr.mxu1 %v4230_v5  ;;  %663 = vmatprep.subr.mxu0 %v4401_v19  ;;  %v757_v5 = vsub.f32 %v4440_v28, %v756_v45  ;;  %v788_v6 = vand.u32 4294901760, %v787_v63 }
  0x2a   :  { %587 = vmatpush1.msra.mxu1 %v4245_v11  ;;  %665 = vmatpush1.msra.mxu0 %v4406_v25  ;;  %v774_v11 = vand.u32 4294901760, %v4481_v46  ;;  %v792_v58 = vand.u32 4294901760, %v4499_v10  ;;  %v781_v61 = vsub.f32 %v4486_v9, %v780_v55 }
  0x2b   :  { %589 = vmatprep.subr.mxu1 %v4247_v12  ;;  %667 = vmatprep.subr.mxu0 %v4414_v23  ;;  %v763_v12 = vsub.f32 %v4455_v37, %v762_v48 }
  0x2c   :  { %591 = vmatpush1.msra.mxu1 %v4255_v15  ;;  %669 = vmatpush1.msra.mxu0 %v4428_v27  ;;  %v752_v15 = vand.u32 4294901760, %v751_v51  ;;  %v775_v59 = vsub.f32 %v4481_v46, %v774_v11  ;;  %v793_v0 = vsub.f32 %v4499_v10, %v792_v58  ;;  %v782_v3 = vand.u32 4294901760, %v781_v61 }
  0x2d   :  { %593 = vmatprep.subr.mxu1 %v4257_v16  ;;  %671 = vmatprep.subr.mxu0 %v4442_v33  ;;  %v758_v16 = vand.u32 4294901760, %v757_v5  ;;  %v764_v60 = vand.u32 4294901760, %v763_v12 }
  0x2e   :  { %595 = vmatpush1.msra.mxu1 %v4259_v17  ;;  %673 = vmatpush1.msra.mxu0 %v4449_v35  ;;  %v798_v17 = vand.u32 4294901760, %v4512_v53  ;;  %v776_v1 = vand.u32 4294901760, %v775_v59  ;;  %v794_v7 = vand.u32 4294901760, %v793_v0 }
  0x2f   :  { %597 = vmatprep.subr.mxu1 %v4268_v20  ;;  %675 = vmatprep.subr.mxu0 %v4460_v38  ;;  %v804_v20 = vand.u32 4294901760, %v4517_v54 }
  0x30   :  { %599 = vmatpush1.msra.mxu1 %v4273_v22  ;;  %632 = vmatprep.mubr.f32.mxu1 %v6063_v24  ;;  %v770_v22 = vand.u32 4294901760, %v769_v57  ;;  %v799_v2 = vsub.f32 %v4512_v53, %v798_v17 }
  0x31   :  { %677 = vmatpush1.msra.mxu0 %v4471_v41  ;;  %634 = vmatmul.mubr.f32.vlgmr.msra.gmra.mxu1 %v4301_v34  ;;  %v805_v4 = vsub.f32 %v4517_v54, %v804_v20 }
  0x32   :  { %679 = vmatprep.subr.mxu0 %v4477_v44  ;;  %753 = vmatprep.subr.mxu1 %v752_v15  ;;  %v800_v8 = vand.u32 4294901760, %v799_v2  ;;  %v4175_v2 = vmov 1983009808  }
  0x33   :  { %681 = vmatpush1.msra.mxu0 %v4488_v47  ;;  %759 = vmatpush1.msra.mxu1 %v758_v16  ;;  %v806_v13 = vand.u32 4294901760, %v805_v4 }
  0x34   :  { %714 = vmatprep.mubr.f32.mxu0 %v6063_v24  ;;  %765 = vmatprep.subr.mxu1 %v764_v60 }
  0x35   :  { %872 = vmatprep.subr.mxu0 %v4434_v31  ;;  %720 = vmatmul.mubr.f32.vlgmr.msra.gmra.mxu0 %v4357_v62  ;;  %v1323_v62 = vld [vmem:[%s6058_s3 + $0xf8] sm:$0xff] }
  0x36   :  { %771 = vmatpush1.msra.mxu1 %v770_v22  ;;  %875 = vmatpush1.msra.mxu0 %v4440_v28 }
  0x37   :  { %777 = vmatprep.subr.mxu1 %v776_v1  ;;  %878 = vmatprep.subr.mxu0 %v4455_v37 }
  0x38   :  { %783 = vmatpush1.msra.mxu1 %v782_v3  ;;  %881 = vmatpush1.msra.mxu0 %v4469_v40  ;;  %v1220_v3 = vunpack.c.l.s4 %v4175_v2 }
  0x39   :  { %789 = vmatprep.subr.mxu1 %v788_v6  ;;  %884 = vmatprep.subr.mxu0 %v4481_v46 }
  0x3a   :  { %795 = vmatpush1.msra.mxu1 %v794_v7  ;;  %887 = vmatpush1.msra.mxu0 %v4486_v9 }
  0x3b   :  { %801 = vmatprep.subr.mxu1 %v800_v8  ;;  %890 = vmatprep.subr.mxu0 %v4494_v49  ;;  %v1222_v8 = vlaneseq }
  0x3c   :  { %807 = vmatpush1.msra.mxu1 %v806_v13  ;;  %840 = vmatprep.mubr.f32.mxu1 %v6063_v24 }
  0x3d   :  { %893 = vmatpush1.msra.mxu0 %v4499_v10  ;;  %842 = vmatmul.mubr.f32.vlgmr.msra.gmra.mxu1 %v4301_v34 }
  0x3e   :  { %896 = vmatprep.subr.mxu0 %v4512_v53  ;;  %964 = vmatprep.subr.mxu1 %v4401_v19 }
  0x3f   :  { %899 = vmatpush1.msra.mxu0 %v4517_v54  ;;  %932 = vmatprep.mubr.f32.mxu0 %v6063_v24 }
  0x40   :  { %966 = vmatpush1.msra.mxu1 %v4406_v25  ;;  %935 = vmatmul.mubr.f32.vlgmr.msra.gmra.mxu0 %v4321_v42  ;;  %v48_v42 = vld [vmem:[%s6057_s2] sm:$0xff] }
  0x41   :  { %968 = vmatprep.subr.mxu1 %v4414_v23  ;;  %1050 = vmatprep.subr.mxu0 %v750_v43 }
  0x42   :  { %970 = vmatpush1.msra.mxu1 %v4428_v27  ;;  %1054 = vmatpush1.msra.mxu0 %v756_v45 }
  0x43   :  { %972 = vmatprep.subr.mxu1 %v4442_v33  ;;  %1058 = vmatprep.subr.mxu0 %v762_v48 }
  0x44   :  { %974 = vmatpush1.msra.mxu1 %v4449_v35  ;;  %1062 = vmatpush1.msra.mxu0 %v768_v52 }
  0x45   :  { %976 = vmatprep.subr.mxu1 %v4460_v38  ;;  %1066 = vmatprep.subr.mxu0 %v774_v11 }
  0x46   :  { %978 = vmatpush1.msra.mxu1 %v4471_v41  ;;  %1070 = vmatpush1.msra.mxu0 %v780_v55 }
  0x47   :  { %980 = vmatprep.subr.mxu1 %v4477_v44  ;;  %1074 = vmatprep.subr.mxu0 %v786_v56 }
  0x48   :  { %982 = vmatpush1.msra.mxu1 %v4488_v47  ;;  %1015 = vmatprep.mubr.f32.mxu1 %v6063_v24 }
  0x49   :  { %1078 = vmatpush1.msra.mxu0 %v792_v58  ;;  %1019 = vmatmul.mubr.f32.vlgmr.msra.gmra.mxu1 %v4336_v50  ;;  %v4174_v50 = vmov 0  }
  0x4a   :  { %1082 = vmatprep.subr.mxu0 %v798_v17  ;;  %1150 = vmatprep.subr.mxu1 %v4401_v19  ;;  %v4634_v19 = vand.u32 4294901760, %v1323_v62 }
  0x4b   :  { %1086 = vmatpush1.msra.mxu0 %v804_v20  ;;  %1119 = vmatprep.mubr.f32.mxu0 %v6063_v24 }
  0x4c   :  { %1152 = vmatpush1.msra.mxu1 %v4406_v25  ;;  %1121 = vmatmul.mubr.f32.vlgmr.msra.gmra.mxu0 %v4301_v34  ;;  %v4636_v25 = vand.u32 4294901760, %v1307_v14  ;;  %v4646_v29 = vsub.f32 %v1323_v62, %v4634_v19 }
  0x4d   :  { %1154 = vmatprep.subr.mxu1 %v4414_v23  ;;  %1201 = vmatprep.mubr.f32.mxu1 %v6063_v24 }
  0x4e   :  { %1156 = vmatpush1.msra.mxu1 %v4428_v27  ;;  %4149 = vset.pattern.permute.xlu0 %v4174_v50  ;;  %v4649_v26 = vsub.f32 %v1307_v14, %v4636_v25  ;;  %v4652_v27 = vsub.f32 %v1322_v18, %v4638_v21  ;;  %v6084_v31 = vand.u32 4294901760, %v4646_v29 }
  0x4f   :  { %1158 = vmatprep.subr.mxu1 %v4442_v33  ;;  %51 = vperm.xlu0 %4149, %v48_v42  }
  0x50   :  { %1160 = vmatpush1.msra.mxu1 %v4449_v35  ;;  %3627 = vmatprep.subr.mxu0 %v4634_v19  ;;  %v6083_v28 = vand.u32 4294901760, %v4649_v26  ;;  %v6082_v33 = vand.u32 4294901760, %v4652_v27  ;;  %v1613_v35 = vsub.f32 %v4646_v29, %v6084_v31 }
  0x51   :  { %1162 = vmatprep.subr.mxu1 %v4460_v38  ;;  %3628 = vmatpush3.msra.mxu0 %v4636_v25 }
  0x52   :  { %1164 = vmatpush1.msra.mxu1 %v4471_v41  ;;  %3629 = vmatprep.subr.mxu0 %v4638_v21  ;;  %v1501_v36 = vsub.f32 %v4649_v26, %v6083_v28  ;;  %v1620_v37 = vsub.f32 %v4652_v27, %v6082_v33  ;;  %v1614_v39 = vand.u32 4294901760, %v1613_v35  ;;  %v1223_v35 = vshrl.u32 %v1222_v8, 7  ;;  %v1310_v33 = vld [vmem:[%s6058_s3 + $0x90] sm:$0xff] }
  0x53   :  { %1166 = vmatprep.subr.mxu1 %v4477_v44 }
  0x54   :  { %1168 = vmatpush1.msra.mxu1 %v4488_v47  ;;  %v1502_v40 = vand.u32 4294901760, %v1501_v36  ;;  %v1621_v41 = vand.u32 4294901760, %v1620_v37  ;;  %v1321_v36 = vld [vmem:[%s6058_s3 + $0xe8] sm:$0xff] }
  0x55   :  { %1203 = vmatmul.mubr.f32.vlgmr.msra.gmra.mxu1 %v4301_v34  ;;  %v1306_v34 = vld [vmem:[%s6058_s3 + $0x70] sm:$0xff]  ;;  %3662 = vmatprep.subr.mxu1 %v1614_v39  ;;  %v4680_v39 = vand.u32 4294901760, %v1321_v36 }
  0x56   :  { %v4643_v23 = vand.u32 4294901760, %v1306_v34  ;;  %3663 = vmatpush3.msra.mxu1 %v1502_v40  ;;  %v1305_v40 = vld [vmem:[%s6058_s3 + $0x68] sm:$0xff] }
  0x57   :  { %3664 = vmatprep.subr.mxu1 %v1621_v41 }
  0x58   :  { %v4656_v30 = vsub.f32 %v1306_v34, %v4643_v23  ;;  %3630 = vmatpush3.msra.mxu0 %v4643_v23  ;;  %v1221_v34 = vunpack.c.0.s8 %v1220_v3  ;;  %v1317_v3 = vld [vmem:[%s6058_s3 + $0xc8] sm:$0xff] }
  0x59   :  { %3631 = vmatprep.subr.mxu0 %v4680_v39 }
  0x5a   :  { %v6080_v32 = vand.u32 4294901760, %v4656_v30 }
  0x5c   :  { %v1508_v38 = vsub.f32 %v4656_v30, %v6080_v32 }
  0x5e   :  { %v1509_v43 = vand.u32 4294901760, %v1508_v38 }
  0x60   :  { %3665 = vmatpush3.msra.mxu1 %v1509_v43 }
  0xca   :  { %v52_v48 = vpop.permute.xlu0 %51 }
  0xd3   :  { %v152_v44 = vpop.f32.mrf.mxu0 }
  0xd4   :  { %v153_v11 = vadd.f32 %v152_v44, %v52_v48 }
  0xd5   :  { %v154_v45 = vpop.f32.mrf.mxu0 }
  0xd6   :  { %v155_v52 = vadd.f32 %v154_v45, %v52_v48  ;;  %v4685_v45 = vand.u32 4294901760, %v1305_v40 }
  0xd8   :  { %3632 = vmatpush3.msra.mxu0 %v4685_v45 }
  0xd9   :  { %v274_v46 = vpop.f32.mrf.mxu1 }
  0xda   :  { %v275_v56 = vadd.f32 %v274_v46, %v153_v11  ;;  %v1320_v46 = vld [vmem:[%s6058_s3 + $0xe0] sm:$0xff]  ;;  %v1319_v11 = vld [vmem:[%s6058_s3 + $0xd8] sm:$0xff] }
  0xdb   :  { %v276_v47 = vpop.f32.mrf.mxu1 }
  0xdc   :  { %v277_v12 = vadd.f32 %v276_v47, %v155_v52  ;;  %v4693_v47 = vand.u32 4294901760, %v1320_v46  ;;  %v4704_v52 = vsub.f32 %v1305_v40, %v4685_v45 }
  0xdd   :  { %v367_v9 = vpop.f32.mrf.mxu0 }
  0xde   :  { %v368_v59 = vadd.f32 %v367_v9, %v275_v56  ;;  %v4691_v9 = vsub.f32 %v1321_v36, %v4680_v39  ;;  %v1303_v56 = vld [vmem:[%s6058_s3 + $0x58] sm:$0xff]  ;;  %3633 = vmatprep.subr.mxu0 %v4693_v47 }
  0xdf   :  { %v369_v49 = vpop.f32.mrf.mxu0 }
  0xe0   :  { %v370_v57 = vadd.f32 %v369_v49, %v277_v12  ;;  %v4714_v12 = vsub.f32 %v1320_v46, %v4693_v47 }
  0xe5   :  { %v451_v10 = vpop.f32.mrf.mxu1 }
  0xe6   :  { %v452_v61 = vadd.f32 %v451_v10, %v368_v59  ;;  %v1318_v59 = vld [vmem:[%s6058_s3 + $0xd0] sm:$0xff] }
  0xe7   :  { %v453_v5 = vpop.f32.mrf.mxu1 }
  0xe8   :  { %v553_v51 = vpop.f32.mrf.mxu0  ;;  %v454_v17 = vadd.f32 %v453_v5, %v370_v57  ;;  %v6077_v57 = vand.u32 4294901760, %v4704_v52 }
  0xe9   :  { %v554_v4 = vadd.f32 %v553_v51, %v452_v61  ;;  %v4701_v51 = vsub.s32 %v1221_v34, %v1223_v35 }
  0xea   :  { %v555_v53 = vpop.f32.mrf.mxu0 }
  0xeb   :  { %v556_v0 = vadd.f32 %v555_v53, %v454_v17 }
  0xf1   :  { %v635_v54 = vpop.f32.mrf.mxu1 }
  0xf2   :  { %v636_v42 = vadd.f32 %v635_v54, %v554_v4  ;;  %v6078_v54 = vand.u32 4294901760, %v4691_v9 }
  0xf3   :  { %v637_v15 = vpop.f32.mrf.mxu1 }
  0xf4   :  { %v638_v6 = vadd.f32 %v637_v15, %v556_v0  ;;  %v1209_v41 = vmax.f32 %v636_v42, 0.0  ;;  %v1627_v17 = vsub.f32 %v4691_v9, %v6078_v54 }
  0xf5   :  { %v721_v55 = vpop.f32.mrf.mxu0 }
  0xf6   :  { %v722_v60 = vadd.f32 %v721_v55, %v52_v48  ;;  %v1210_v14 = vmax.f32 %v638_v6, 0.0  ;;  %v4716_v55 = vand.u32 4294901760, %v1319_v11  ;;  %v1628_v4 = vand.u32 4294901760, %v1627_v17 }
  0xf7   :  { %v723_v58 = vpop.f32.mrf.mxu0 }
  0xf8   :  { %v724_v20 = vadd.f32 %v723_v58, %v52_v48  ;;  %v1304_v48 = vld [vmem:[%s6058_s3 + $0x60] sm:$0xff]  ;;  %v4699_v49 = vmax.f32 %v1209_v41, %v1210_v14  ;;  %v4737_v61 = vsub.f32 %v1319_v11, %v4716_v55  ;;  %v1301_v14 = vld [vmem:[%s6058_s3 + $0x48] sm:$0xff]  ;;  %3666 = vmatprep.subr.mxu1 %v1628_v4  ;;  %v1299_v4 = vld [vmem:[%s6058_s3 + $0x38] sm:$0xff] }
  0xf9   :  { %v4706_v5 = vand.u32 4294901760, %v1304_v48 }
  0xfb   :  { %v4724_v58 = vsub.f32 %v1304_v48, %v4706_v5  ;;  %3634 = vmatpush3.msra.mxu0 %v4706_v5 }
  0xfc   :  { %3635 = vmatprep.subr.mxu0 %v4716_v55 }
  0xfd   :  { %v843_v16 = vpop.f32.mrf.mxu1  ;;  %v6075_v0 = vand.u32 4294901760, %v4724_v58 }
  0xfe   :  { %v844_v1 = vadd.f32 %v843_v16, %v722_v60  ;;  %v4726_v16 = vand.u32 4294901760, %v1303_v56  ;;  %v6076_v60 = vand.u32 4294901760, %v4714_v12 }
  0xff   :  { %v845_v63 = vpop.f32.mrf.mxu1  ;;  %v1522_v42 = vsub.f32 %v4724_v58, %v6075_v0 }
 0x100   :  { %v936_v22 = vpop.f32.mrf.mxu0  ;;  %v846_v7 = vadd.f32 %v845_v63, %v724_v20  ;;  %v4739_v20 = vand.u32 4294901760, %v1318_v59  ;;  %v1302_v63 = vld [vmem:[%s6058_s3 + $0x50] sm:$0xff]  ;;  %3636 = vmatpush3.msra.mxu0 %v4726_v16  ;;  %v1634_v6 = vsub.f32 %v4714_v12, %v6076_v60 }
 0x101   :  { %v937_v50 = vadd.f32 %v936_v22, %v844_v1  ;;  %v1515_v22 = vsub.f32 %v4704_v52, %v6077_v57  ;;  %v4750_v1 = vsub.f32 %v1303_v56, %v4726_v16  ;;  %v4752_v2 = vand.u32 4294901760, %v1302_v63  ;;  %v1300_v56 = vld [vmem:[%s6058_s3 + $0x40] sm:$0xff] }
 0x102   :  { %v938_v13 = vpop.f32.mrf.mxu0  ;;  %v4763_v8 = vsub.f32 %v1318_v59, %v4739_v20  ;;  %3637 = vmatprep.subr.mxu0 %v4739_v20  ;;  %v1635_v34 = vand.u32 4294901760, %v1634_v6  ;;  %v1523_v40 = vand.u32 4294901760, %v1522_v42  ;;  %v1315_v59 = vld [vmem:[%s6058_s3 + $0xb8] sm:$0xff] }
 0x103   :  { %v939_v18 = vadd.f32 %v938_v13, %v846_v7  ;;  %v6074_v7 = vand.u32 4294901760, %v4737_v61  ;;  %v1516_v13 = vand.u32 4294901760, %v1515_v22  ;;  %3638 = vmatpush3.msra.mxu0 %v4752_v2 }
 0x104   :  { %v6069_v36 = vand.u32 4294901760, %v4763_v8 }
 0x105   :  { %v1641_v35 = vsub.f32 %v4737_v61, %v6074_v7  ;;  %3667 = vmatpush3.msra.mxu1 %v1516_v13 }
 0x106   :  { %3668 = vmatprep.subr.mxu1 %v1635_v34 }
 0x107   :  { %v1642_v48 = vand.u32 4294901760, %v1641_v35  ;;  %3669 = vmatpush3.msra.mxu1 %v1523_v40  ;;  %v4823_v40 = vand.u32 4294901760, %v1315_v59 }
 0x109   :  { %v1020_v62 = vpop.f32.mrf.mxu1  ;;  %3670 = vmatprep.subr.mxu1 %v1642_v48  ;;  %v4832_v48 = vand.u32 4294901760, %v1299_v4 }
 0x10a   :  { %v1021_v37 = vadd.f32 %v1020_v62, %v937_v50  ;;  %v6070_v50 = vand.u32 4294901760, %v4750_v1  ;;  %v4771_v62 = vsub.f32 %v1302_v63, %v4752_v2 }
 0x10b   :  { %v1022_v38 = vpop.f32.mrf.mxu1 }
 0x10c   :  { %v1023_v43 = vadd.f32 %v1022_v38, %v939_v18  ;;  %v1122_v44 = vpop.f32.mrf.mxu0  ;;  %v1529_v41 = vsub.f32 %v4750_v1, %v6070_v50 }
 0x10d   :  { %v1123_v53 = vadd.f32 %v1122_v44, %v1021_v37  ;;  %v4781_v37 = vand.u32 4294901760, %v1317_v3  ;;  %v1316_v44 = vld [vmem:[%s6058_s3 + $0xc0] sm:$0xff] }
 0x10e   :  { %v1124_v10 = vpop.f32.mrf.mxu0  ;;  %v1530_v22 = vand.u32 4294901760, %v1529_v41 }
 0x10f   :  { %v1125_v15 = vadd.f32 %v1124_v10, %v1023_v43  ;;  %v6067_v43 = vand.u32 4294901760, %v4771_v62  ;;  %v1648_v10 = vsub.f32 %v4763_v8, %v6069_v36  ;;  %v4794_v11 = vsub.f32 %v1317_v3, %v4781_v37  ;;  %3639 = vmatprep.subr.mxu0 %v4781_v37 }
 0x110   :  { %3671 = vmatpush3.msra.mxu1 %v1530_v22  ;;  %v4839_v22 = vsub.f32 %v1315_v59, %v4823_v40 }
 0x111   :  { %v1536_v3 = vsub.f32 %v4771_v62, %v6067_v43  ;;  %v1649_v6 = vand.u32 4294901760, %v1648_v10  ;;  %v6065_v13 = vand.u32 4294901760, %v4794_v11 }
 0x112   :  { %6181 = vst [vmem:[#allocation7_spill] sm:$0xff] %v4839_v22  ;;  %v6072_v24 = vand.u32 4294901760, %v4839_v22 }
 0x113   :  { %v1537_v35 = vand.u32 4294901760, %v1536_v3  ;;  %3672 = vmatprep.subr.mxu1 %v1649_v6  ;;  %v1298_v6 = vld [vmem:[%s6058_s3 + $0x30] sm:$0xff] }
 0x114   :  { %v4866_v43 = vand.u32 4294901760, %v1298_v6 }
 0x115   :  { %v1204_v18 = vpop.f32.mrf.mxu1  ;;  %3673 = vmatpush3.msra.mxu1 %v1537_v35 }
 0x116   :  { %v1205_v38 = vadd.f32 %v1204_v18, %v1123_v53  ;;  %v4796_v53 = vand.u32 4294901760, %v1301_v14  ;;  %v4815_v18 = vand.u32 4294901760, %v1316_v44  ;;  %v4882_v50 = vsub.f32 %v1298_v6, %v4866_v43 }
 0x117   :  { %v1206_v46 = vpop.f32.mrf.mxu1 }
 0x118   :  { %v1211_v17 = vmax.f32 %v1205_v38, 0.0  ;;  %v1207_v63 = vadd.f32 %v1206_v46, %v1125_v15  ;;  %v4813_v42 = vsub.f32 %v1301_v14, %v4796_v53  ;;  %v1314_v15 = vld [vmem:[%s6058_s3 + $0xb0] sm:$0xff]  ;;  %3640 = vmatpush3.msra.mxu0 %v4796_v53  ;;  %v4821_v38 = vand.u32 4294901760, %v1300_v56  ;;  %6184 = vst [vmem:[#allocation10_spill] sm:$0xff] %v4882_v50 }
 0x119   :  { %v1655_v14 = vsub.f32 %v4794_v11, %v6065_v13  ;;  %v4830_v46 = vsub.f32 %v1316_v44, %v4815_v18  ;;  %3641 = vmatprep.subr.mxu0 %v4815_v18  ;;  %v4841_v3 = vand.u32 4294901760, %v1314_v15  ;;  %v6081_v0 = vand.u32 4294901760, %v4882_v50 }
 0x11a   :  { %v1212_v34 = vmax.f32 %v1207_v63, 0.0  ;;  %v6066_v41 = vand.u32 4294901760, %v4813_v42  ;;  %v4836_v63 = vsub.f32 %v1300_v56, %v4821_v38  ;;  %3642 = vmatpush3.msra.mxu0 %v4821_v38  ;;  %v4852_v56 = vsub.f32 %v1299_v4, %v4832_v48 }
 0x11b   :  { %v1656_v44 = vand.u32 4294901760, %v1655_v14  ;;  %3643 = vmatprep.subr.mxu0 %v4823_v40  ;;  %v4859_v13 = vsub.f32 %v1314_v15, %v4841_v3 }
 0x11c   :  { %v1214_v10 = vmax.f32 %v1211_v17, %v1212_v34  ;;  %6180 = vst [vmem:[#allocation6_spill] sm:$0xff] %v4836_v63  ;;  %v1543_v17 = vsub.f32 %v4813_v42, %v6066_v41  ;;  %v6068_v34 = vand.u32 4294901760, %v4830_v46  ;;  %6182 = vst [vmem:[#allocation8_spill] sm:$0xff] %v4852_v56  ;;  %v6071_v35 = vand.u32 4294901760, %v4836_v63  ;;  %3644 = vmatpush3.msra.mxu0 %v4832_v48 }
 0x11d   :  { %6183 = vst [vmem:[#allocation9_spill] sm:$0xff] %v4859_v13  ;;  %3674 = vmatprep.subr.mxu1 %v1656_v44  ;;  %v6073_v41 = vand.u32 4294901760, %v4852_v56  ;;  %3645 = vmatprep.subr.mxu0 %v4841_v3  ;;  %v1669_v44 = vsub.f32 %v4839_v22, %v6072_v24  ;;  %v6079_v36 = vand.u32 4294901760, %v4859_v13 }
 0x11e   :  { %v1215_v59 = vmax.f32 %v4699_v49, %v1214_v10  ;;  %v1544_v14 = vand.u32 4294901760, %v1543_v17  ;;  %v1662_v4 = vsub.f32 %v4830_v46, %v6068_v34  ;;  %v1550_v15 = vsub.f32 %v4836_v63, %v6071_v35  ;;  %3646 = vmatpush3.msra.mxu0 %v4866_v43 }
 0x11f   :  { %v1557_v34 = vsub.f32 %v4852_v56, %v6073_v41  ;;  %v1297_v41 = vld [vmem:[%s6058_s3 + $0x28] sm:$0xff]  ;;  %v1670_v6 = vand.u32 4294901760, %v1669_v44 }
 0x120   :  { %v1254_v49 = vcombine.high %v1215_v59, %v1215_v59  ;;  %v1225_v10 = vrot.slane %v1215_v59, %v4701_v51  ;;  %1217 = vst.msk [vmem:[#allocation2] sm:$0x1] %vm1216_vm2, %v1215_v59  ;;  %3675 = vmatpush3.msra.mxu1 %v1544_v14  ;;  %v1663_v17 = vand.u32 4294901760, %v1662_v4  ;;  %v1551_v14 = vand.u32 4294901760, %v1550_v15  ;;  %v1313_v4 = vld [vmem:[%s6058_s3 + $0xa8] sm:$0xff] }
 0x121   :  { %v1558_v7 = vand.u32 4294901760, %v1557_v34  ;;  %v1296_v34 = vld [vmem:[%s6058_s3 + $0x20] sm:$0xff] }
 0x122   :  { %v1261_v59 = vrot.slane %v1254_v49, %v4701_v51  ;;  %1226 = vrot.lane.b32.xlu0 %v1225_v10, %s4176_s9  ;;  %v1239_v35 = vcombine.high %v1225_v10, %v1225_v10  ;;  %v1230_v24 = vrot.slane %v1225_v10, 7  ;;  %3676 = vmatprep.subr.mxu1 %v1663_v17  ;;  %v1676_v49 = vsub.f32 %v4859_v13, %v6079_v36  ;;  %v1312_v10 = vld [vmem:[%s6058_s3 + $0xa0] sm:$0xff] }
 0x123   :  { %3677 = vmatpush3.msra.mxu1 %v1551_v14  ;;  %v1564_v17 = vsub.f32 %v4882_v50, %v6081_v0  ;;  %v4911_v36 = vand.u32 4294901760, %v1313_v4  ;;  %v1295_v14 = vld [vmem:[%s6058_s3 + $0x18] sm:$0xff]  ;;  %v4927_v0 = vand.u32 4294901760, %v1312_v10  ;;  %v4938_v50 = vand.u32 4294901760, %v1296_v34 }
 0x124   :  { %1242 = vrot.lane.b32.xlu1 %v1239_v35, %s4176_s9  ;;  %v1276_v15 = vcombine.high %v1261_v59, %v1261_v59  ;;  %v1246_v60 = vrot.slane %v1239_v35, 7  ;;  %v4901_v57 = vrot.slane %v1230_v24, 2  ;;  %v1268_v54 = vrot.slane %v1261_v59, 7  ;;  %1241 = vst.msk [vmem:[#allocation2 + $0x2] sm:$0x1] %vm1216_vm2, %v1239_v35  ;;  %3678 = vmatprep.subr.mxu1 %v1670_v6  ;;  %v1311_v35 = vld [vmem:[%s6058_s3 + $0x98] sm:$0xff] }
 0x125   :  { %1263 = vst.msk [vmem:[#allocation2 + $0x4] sm:$0x1] %vm1216_vm2, %v1261_v59  ;;  %v1677_v44 = vand.u32 4294901760, %v1676_v49  ;;  %v4913_v24 = vand.u32 4294901760, %v1297_v41  ;;  %3679 = vmatpush3.msra.mxu1 %v1558_v7  ;;  %6185 = vst [vmem:[#allocation11_spill] sm:$0xff] %v4927_v0  ;;  %v1565_v28 = vand.u32 4294901760, %v1564_v17  ;;  %v4933_v31 = vsub.f32 %v1313_v4, %v4911_v36  ;;  %3647 = vmatprep.subr.mxu0 %v4911_v36 }
 0x126   :  { %1279 = vrot.lane.b32.xlu0 %v1276_v15, %s4176_s9  ;;  %v4922_v6 = vrot.slane %v1246_v60, 2  ;;  %v1283_v49 = vrot.slane %v1276_v15, 7  ;;  %v4924_v32 = vrot.slane %v1268_v54, 2  ;;  %1278 = vst.msk [vmem:[#allocation2 + $0x6] sm:$0x1] %vm1216_vm2, %v1276_v15  ;;  %6188 = vst [vmem:[#allocation14_spill] sm:$0xff] %v4938_v50  ;;  %v4948_v15 = vsub.f32 %v1312_v10, %v4927_v0 }
 0x127   :  { %3680 = vmatprep.subr.mxu1 %v1677_v44  ;;  %6186 = vst [vmem:[#allocation12_spill] sm:$0xff] %v4933_v31  ;;  %v4936_v60 = vsub.f32 %v1297_v41, %v4913_v24  ;;  %v1294_v54 = vld [vmem:[%s6058_s3 + $0x10] sm:$0xff]  ;;  %v4950_v4 = vand.u32 4294901760, %v1311_v35  ;;  %v4952_v44 = vand.u32 4294901760, %v1295_v14  ;;  %3648 = vmatpush3.msra.mxu0 %v4913_v24  ;;  %v4958_v13 = vsub.f32 %v1296_v34, %v4938_v50  ;;  %v1293_v10 = vld [vmem:[%s6058_s3 + $0x8] sm:$0xff] }
 0x128   :  { %1264 = vrot.lane.b32.xlu1 %v1261_v59, %s4176_s9  ;;  %v4945_v7 = vrot.slane %v1283_v49, 2  ;;  %6189 = vst [vmem:[#allocation15_spill] sm:$0xff] %v4948_v15  ;;  %3681 = vmatpush3.msra.mxu1 %v1565_v28  ;;  %v4960_v59 = vand.u32 4294901760, %v1310_v33  ;;  %v4972_v41 = vand.u32 4294901760, %v1294_v54  ;;  %v6197_v34 = vand.u32 4294901760, %v4933_v31 }
 0x129   :  { %6187 = vst [vmem:[#allocation13_spill] sm:$0xff] %v4936_v60  ;;  %6190 = vst [vmem:[#allocation16_spill] sm:$0xff] %v4950_v4  ;;  %3649 = vmatprep.subr.mxu0 %v4927_v0  ;;  %v4967_v49 = vsub.f32 %v1311_v35, %v4950_v4  ;;  %v4970_v28 = vsub.f32 %v1295_v14, %v4952_v44  ;;  %v6198_v56 = vand.u32 4294901760, %v4936_v60  ;;  %v6200_v14 = vand.u32 4294901760, %v4948_v15 }
 0x12a   :  { %6191 = vst [vmem:[#allocation17_spill] sm:$0xff] %v4952_v44  ;;  %6192 = vst [vmem:[#allocation18_spill] sm:$0xff] %v4958_v13  ;;  %1248 = vrot.lane.b32.xlu0 %v4922_v6, %s4176_s9  ;;  %3650 = vmatpush3.msra.mxu0 %v4938_v50  ;;  %v1683_v17 = vsub.f32 %v4933_v31, %v6197_v34  ;;  %v4983_v35 = vsub.f32 %v1310_v33, %v4960_v59  ;;  %v1309_v33 = vld [vmem:[%s6058_s3 + $0x88] sm:$0xff] }
 0x12b   :  { %6193 = vst [vmem:[#allocation19_spill] sm:$0xff] %v4960_v59  ;;  %6194 = vst [vmem:[#allocation20_spill] sm:$0xff] %v4967_v49  ;;  %v1571_v22 = vsub.f32 %v4936_v60, %v6198_v56  ;;  %3651 = vmatprep.subr.mxu0 %v4950_v4  ;;  %v1690_v50 = vsub.f32 %v4948_v15, %v6200_v14  ;;  %v4994_v56 = vsub.f32 %v1294_v54, %v4972_v41  ;;  %v1308_v54 = vld [vmem:[%s6058_s3 + $0x80] sm:$0xff] }
 0x12c   :  { %6195 = vst [vmem:[#allocation21_spill] sm:$0xff] %v4970_v28  ;;  %6196 = vst [vmem:[#allocation22_spill] sm:$0xff] %v4972_v41  ;;  %1232 = vrot.lane.b32.xlu1 %v4901_v57, %s4176_s9  ;;  %3652 = vmatpush3.msra.mxu0 %v4952_v44  ;;  %v1684_v60 = vand.u32 4294901760, %v1683_v17  ;;  %v6201_v14 = vand.u32 4294901760, %v4958_v13  ;;  %v6202_v44 = vand.u32 4294901760, %v4967_v49  ;;  %v6203_v17 = vand.u32 4294901760, %v4970_v28 }
 0x12d   :  { %6199 = vst [vmem:[#allocation23_spill] sm:$0xff] %v4983_v35  ;;  %v1572_v4 = vand.u32 4294901760, %v1571_v22  ;;  %3653 = vmatprep.subr.mxu0 %v4960_v59  ;;  %v1691_v15 = vand.u32 4294901760, %v1690_v50  ;;  %v6204_v50 = vand.u32 4294901760, %v4983_v35  ;;  %v5027_v0 = vand.u32 4294901760, %v1309_v33 }
 0x12e   :  { %v1578_v34 = vsub.f32 %v4958_v13, %v6201_v14  ;;  %1285 = vrot.lane.b32.xlu0 %v4945_v7, %s4176_s9  ;;  %v1697_v22 = vsub.f32 %v4967_v49, %v6202_v44  ;;  %v1585_v14 = vsub.f32 %v4970_v28, %v6203_v17  ;;  %v1292_v13 = vld [vmem:[%s6058_s3] sm:$0xff]  ;;  %3654 = vmatpush3.msra.mxu0 %v4972_v41  ;;  %v5029_v44 = vand.u32 4294901760, %v1293_v10 }
 0x12f   :  { %3682 = vmatprep.subr.mxu1 %v1684_v60  ;;  %v1704_v63 = vsub.f32 %v4983_v35, %v6204_v50  ;;  %6205 = vst [vmem:[#allocation24_spill] sm:$0xff] %v5027_v0  ;;  %v6206_v28 = vand.u32 4294901760, %v4994_v56  ;;  %v5036_v60 = vand.u32 4294901760, %v1308_v54  ;;  %v5039_v50 = vsub.f32 %v1309_v33, %v5027_v0  ;;  %3655 = vmatprep.subr.mxu0 %v5027_v0 }
 0x130   :  { %v1579_v59 = vand.u32 4294901760, %v1578_v34  ;;  %1270 = vrot.lane.b32.xlu1 %v4924_v32, %s4176_s9  ;;  %3683 = vmatpush3.msra.mxu1 %v1572_v4  ;;  %v1698_v17 = vand.u32 4294901760, %v1697_v22  ;;  %v1586_v31 = vand.u32 4294901760, %v1585_v14  ;;  %v5042_v35 = vsub.f32 %v1293_v10, %v5029_v44 }
 0x131   :  { %v1592_v49 = vsub.f32 %v4994_v56, %v6206_v28  ;;  %3684 = vmatprep.subr.mxu1 %v1691_v15  ;;  %v1705_v34 = vand.u32 4294901760, %v1704_v63  ;;  %v5044_v41 = vand.u32 4294901760, %v1292_v13  ;;  %v5048_v22 = vsub.f32 %v1308_v54, %v5036_v60  ;;  %3656 = vmatpush3.msra.mxu0 %v5029_v44 }
 0x132   :  { %3685 = vmatpush3.msra.mxu1 %v1579_v59  ;;  %v6124_v63 = vand.u32 4294901760, %v5039_v50  ;;  %v6123_v15 = vand.u32 4294901760, %v5042_v35  ;;  %3657 = vmatprep.subr.mxu0 %v5036_v60 }
 0x133   :  { %v1593_v4 = vand.u32 4294901760, %v1592_v49  ;;  %3686 = vmatprep.subr.mxu1 %v1698_v17  ;;  %v5054_v28 = vsub.f32 %v1292_v13, %v5044_v41  ;;  %v6122_v10 = vand.u32 4294901760, %v5048_v22  ;;  %3658 = vmatpush3.msra.mxu0 %v5044_v41 }
 0x134   :  { %3687 = vmatpush3.msra.mxu1 %v1586_v31  ;;  %v1711_v59 = vsub.f32 %v5039_v50, %v6124_v63  ;;  %v1599_v49 = vsub.f32 %v5042_v35, %v6123_v15  ;;  %3697 = vmatprep.subr.mxu0 %v4646_v29  ;;  %v6218_v15 = vld [vmem:[#allocation22_spill] sm:$0xff]  ;;  %v6219_v63 = vld [vmem:[#allocation12_spill] sm:$0xff] }
 0x135   :  { %3688 = vmatprep.subr.mxu1 %v1705_v34  ;;  %v6121_v33 = vand.u32 4294901760, %v5054_v28  ;;  %v1718_v31 = vsub.f32 %v5048_v22, %v6122_v10  ;;  %v6217_v10 = vld [vmem:[#allocation10_spill] sm:$0xff] }
 0x136   :  { %3689 = vmatpush3.msra.mxu1 %v1593_v4  ;;  %v1712_v13 = vand.u32 4294901760, %v1711_v59  ;;  %v1600_v54 = vand.u32 4294901760, %v1599_v49 }
 0x137   :  { %v1606_v14 = vsub.f32 %v5054_v28, %v6121_v33  ;;  %v1719_v17 = vand.u32 4294901760, %v1718_v31  ;;  %v6216_v33 = vld [vmem:[#allocation19_spill] sm:$0xff] }
 0x138   :  { %3690 = vmatprep.subr.mxu1 %v1712_v13 }
 0x139   :  { %v1607_v34 = vand.u32 4294901760, %v1606_v14  ;;  %3691 = vmatpush3.msra.mxu1 %v1600_v54 }
 0x13a   :  { %3692 = vmatprep.subr.mxu1 %v1719_v17 }
 0x13b   :  { %3693 = vmatpush3.msra.mxu1 %v1607_v34 }
 0x13c   :  { %3732 = vmatprep.subr.mxu1 %v4634_v19 }
 0x194   :  { %v1227_v4 = vpop.permute.xlu0 %1226 }
 0x195   :  { %1229 = vst.msk [vmem:[#allocation2 + $0x1] sm:$0x1] %vm1216_vm2, %v1227_v4 }
 0x196   :  { %1238 = vst.msk [vmem:[#allocation2 + $0x1] sm:$0x1] %vm1235_vm3, %v4901_v57  ;;  %v1243_v59 = vpop.permute.xlu1 %1242 }
 0x197   :  { %1245 = vst.msk [vmem:[#allocation2 + $0x3] sm:$0x1] %vm1216_vm2, %v1243_v59 }
 0x198   :  { %1253 = vst.msk [vmem:[#allocation2 + $0x3] sm:$0x1] %vm1235_vm3, %v4922_v6  ;;  %v1280_v49 = vpop.permute.xlu0 %1279 }
 0x199   :  { %1282 = vst.msk [vmem:[#allocation2 + $0x7] sm:$0x1] %vm1216_vm2, %v1280_v49 }
 0x19a   :  { %1290 = vst.msk [vmem:[#allocation2 + $0x7] sm:$0x1] %vm1235_vm3, %v4945_v7  ;;  %v1265_v31 = vpop.permute.xlu1 %1264 }
 0x19b   :  { %1267 = vst.msk [vmem:[#allocation2 + $0x5] sm:$0x1] %vm1216_vm2, %v1265_v31 }
 0x19c   :  { %1275 = vst.msk [vmem:[#allocation2 + $0x5] sm:$0x1] %vm1235_vm3, %v4924_v32  ;;  %v1249_v13 = vpop.permute.xlu0 %1248 }
 0x19d   :  { %1251 = vst.msk [vmem:[#allocation2 + $0x2] sm:$0x1] %vm1235_vm3, %v1249_v13 }
 0x19e   :  { %v1233_v57 = vpop.permute.xlu1 %1232 }
 0x19f   :  { %1236 = vst.msk [vmem:[#allocation2] sm:$0x1] %vm1235_vm3, %v1233_v57 }
 0x1a0   :  { %v1286_v54 = vpop.permute.xlu0 %1285 }
 0x1a1   :  { %1288 = vst.msk [vmem:[#allocation2 + $0x6] sm:$0x1] %vm1235_vm3, %v1286_v54 }
 0x1a2   :  { %v1271_v6 = vpop.permute.xlu1 %1270 }
 0x1a3   :  { %1273 = vst.msk [vmem:[#allocation2 + $0x4] sm:$0x1] %vm1235_vm3, %v1271_v6 }
 0x1aa   :  { %v5090_v14 = vld [vmem:[#allocation2] sm:$0xff] }
 0x1ab   :  { %v1371_v7 = vrot.slane %v5090_v14, %v4701_v51 }
 0x1ad   :  { %v1379_v17 = vcombine.high %v1371_v7, %v1371_v7  ;;  %v5094_v34 = vand.u32 4294901760, %v1371_v7 }
 0x1af   :  { %6207 = vst [vmem:[#allocation25_spill] sm:$0xff] %v5094_v34  ;;  %v5096_v32 = vand.u32 4294901760, %v1379_v17  ;;  %v5099_v4 = vsub.f32 %v1371_v7, %v5094_v34  ;;  %v6208_v7 = vld [vmem:[#allocation11_spill] sm:$0xff] }
 0x1b1   :  { %1722 = vmatprep.mubr.f32.mxu1 %v5096_v32  ;;  %v1482_v59 = vsub.f32 %v1379_v17, %v5096_v32  ;;  %v6125_v49 = vand.u32 4294901760, %v5099_v4  ;;  %v6209_v17 = vld [vmem:[#allocation6_spill] sm:$0xff] }
 0x1b2   :  { %1724 = vmatmul.mubr.f32.vlgmr.msra.gmra.mxu1 %v5094_v34  ;;  %v6221_v34 = vld [vmem:[#allocation15_spill] sm:$0xff] }
 0x1b3   :  { %3733 = vmatpush3.msra.mxu1 %v4636_v25  ;;  %v1483_v31 = vand.u32 4294901760, %v1482_v59  ;;  %v1490_v13 = vsub.f32 %v5099_v4, %v6125_v49  ;;  %v6220_v49 = vld [vmem:[#allocation13_spill] sm:$0xff] }
 0x1b4   :  { %3734 = vmatprep.subr.mxu1 %v4638_v21 }
 0x1b5   :  { %3735 = vmatpush3.msra.mxu1 %v4643_v23  ;;  %1966 = vmatprep.mubr.f32.mxu1 %v1483_v31  ;;  %v1484_v57 = vsub.f32 %v1482_v59, %v1483_v31  ;;  %v1491_v6 = vand.u32 4294901760, %v1490_v13  ;;  %v6211_v31 = vld [vmem:[#allocation7_spill] sm:$0xff]  ;;  %v6212_v13 = vld [vmem:[#allocation16_spill] sm:$0xff] }
 0x1b6   :  { %3736 = vmatprep.subr.mxu1 %v4680_v39 }
 0x1b7   :  { %3737 = vmatpush3.msra.mxu1 %v4685_v45  ;;  %v1485_v54 = vand.u32 4294901760, %v1484_v57  ;;  %v6213_v57 = vld [vmem:[#allocation8_spill] sm:$0xff] }
 0x1b8   :  { %3738 = vmatprep.subr.mxu1 %v4693_v47 }
 0x1b9   :  { %3739 = vmatpush3.msra.mxu1 %v4706_v5  ;;  %1486 = vmatprep.mubr.f32.mxu0 %v1485_v54  ;;  %v6214_v54 = vld [vmem:[#allocation17_spill] sm:$0xff] }
 0x1ba   :  { %3740 = vmatprep.subr.mxu1 %v4716_v55  ;;  %1492 = vmatmul.mubr.f32.vlgmr.msra.gmra.mxu0 %v1491_v6  ;;  %v6215_v6 = vld [vmem:[#allocation9_spill] sm:$0xff] }
 0x1bb   :  { %3698 = vmatpush3.msra.mxu0 %v4649_v26  ;;  %3741 = vmatpush3.msra.mxu1 %v4726_v16 }
 0x1bc   :  { %3699 = vmatprep.subr.mxu0 %v4652_v27  ;;  %1859 = vmatprep.mubr.f32.mxu0 %v1482_v59  ;;  %v6210_v59 = vld [vmem:[#allocation14_spill] sm:$0xff] }
 0x1bd   :  { %3742 = vmatprep.subr.mxu1 %v4739_v20  ;;  %3700 = vmatpush3.msra.mxu0 %v4656_v30 }
 0x1be   :  { %3743 = vmatpush3.msra.mxu1 %v4752_v2  ;;  %3701 = vmatprep.subr.mxu0 %v4691_v9 }
 0x1bf   :  { %3744 = vmatprep.subr.mxu1 %v4781_v37  ;;  %3702 = vmatpush3.msra.mxu0 %v4704_v52 }
 0x1c0   :  { %3745 = vmatpush3.msra.mxu1 %v4796_v53  ;;  %3703 = vmatprep.subr.mxu0 %v4714_v12 }
 0x1c1   :  { %3746 = vmatprep.subr.mxu1 %v4815_v18  ;;  %3704 = vmatpush3.msra.mxu0 %v4724_v58 }
 0x1c2   :  { %3747 = vmatpush3.msra.mxu1 %v4821_v38  ;;  %3705 = vmatprep.subr.mxu0 %v4737_v61 }
 0x1c3   :  { %3748 = vmatprep.subr.mxu1 %v4823_v40  ;;  %3706 = vmatpush3.msra.mxu0 %v4750_v1 }
 0x1c4   :  { %3749 = vmatpush3.msra.mxu1 %v4832_v48  ;;  %3707 = vmatprep.subr.mxu0 %v4763_v8 }
 0x1c5   :  { %3750 = vmatprep.subr.mxu1 %v4841_v3  ;;  %3708 = vmatpush3.msra.mxu0 %v4771_v62 }
 0x1c6   :  { %3751 = vmatpush3.msra.mxu1 %v4866_v43  ;;  %3709 = vmatprep.subr.mxu0 %v4794_v11 }
 0x1c7   :  { %3752 = vmatprep.subr.mxu1 %v4911_v36  ;;  %3710 = vmatpush3.msra.mxu0 %v4813_v42 }
 0x1c8   :  { %3753 = vmatpush3.msra.mxu1 %v4913_v24  ;;  %3711 = vmatprep.subr.mxu0 %v4830_v46 }
 0x1c9   :  { %3754 = vmatprep.subr.mxu1 %v6208_v7  ;;  %3712 = vmatpush3.msra.mxu0 %v6209_v17 }
 0x1ca   :  { %3755 = vmatpush3.msra.mxu1 %v6210_v59  ;;  %3713 = vmatprep.subr.mxu0 %v6211_v31 }
 0x1cb   :  { %3756 = vmatprep.subr.mxu1 %v6212_v13  ;;  %3714 = vmatpush3.msra.mxu0 %v6213_v57 }
 0x1cc   :  { %3757 = vmatpush3.msra.mxu1 %v6214_v54  ;;  %3715 = vmatprep.subr.mxu0 %v6215_v6  ;;  %v6222_v54 = vld [vmem:[#allocation18_spill] sm:$0xff] }
 0x1cd   :  { %3758 = vmatprep.subr.mxu1 %v6216_v33  ;;  %3716 = vmatpush3.msra.mxu0 %v6217_v10  ;;  %v6223_v33 = vld [vmem:[#allocation20_spill] sm:$0xff] }
 0x1ce   :  { %3759 = vmatpush3.msra.mxu1 %v6218_v15  ;;  %3717 = vmatprep.subr.mxu0 %v6219_v63  ;;  %v6224_v15 = vand.u32 4294901760, %v5099_v4 }
 0x1cf   :  { %3760 = vmatprep.subr.mxu1 %v5027_v0  ;;  %3718 = vmatpush3.msra.mxu0 %v6220_v49  ;;  %v6225_v0 = vld [vmem:[#allocation21_spill] sm:$0xff] }
 0x1d0   :  { %3761 = vmatpush3.msra.mxu1 %v5029_v44  ;;  %3719 = vmatprep.subr.mxu0 %v6221_v34  ;;  %v6226_v34 = vld [vmem:[#allocation23_spill] sm:$0xff] }
 0x1d1   :  { %3762 = vmatprep.subr.mxu1 %v5036_v60  ;;  %3720 = vmatpush3.msra.mxu0 %v6222_v54 }
 0x1d2   :  { %3763 = vmatpush3.msra.mxu1 %v5044_v41  ;;  %3721 = vmatprep.subr.mxu0 %v6223_v33 }
 0x1d3   :  { %1970 = vmatmul.mubr.f32.vlgmr.msra.gmra.mxu1 %v6224_v15  ;;  %3802 = vmatprep.subr.mxu1 %v4634_v19  ;;  %v1355_v19 = vld [vmem:[%s6058_s3 + $0x1f8] sm:$0xff] }
 0x1d4   :  { %3722 = vmatpush3.msra.mxu0 %v6225_v0  ;;  %3803 = vmatpush3.msra.mxu1 %v4636_v25  ;;  %v5185_v25 = vand.u32 4294901760, %v1355_v19 }
 0x1d5   :  { %2240 = vmatprep.mubr.f32.mxu1 %v5096_v32  ;;  %3723 = vmatprep.subr.mxu0 %v6226_v34 }
 0x1d6   :  { %3804 = vmatprep.subr.mxu1 %v4638_v21  ;;  %3724 = vmatpush3.msra.mxu0 %v4994_v56  ;;  %v1339_v21 = vld [vmem:[%s6058_s3 + $0x178] sm:$0xff] }
 0x1d7   :  { %3805 = vmatpush3.msra.mxu1 %v4643_v23  ;;  %3725 = vmatprep.subr.mxu0 %v5039_v50  ;;  %v6227_v23 = vand.u32 4294901760, %v4646_v29  ;;  %v1338_v29 = vld [vmem:[%s6058_s3 + $0x170] sm:$0xff] }
 0x1d8   :  { %3806 = vmatprep.subr.mxu1 %v4680_v39  ;;  %3726 = vmatpush3.msra.mxu0 %v5042_v35  ;;  %v6228_v39 = vand.u32 4294901760, %v4649_v26  ;;  %v6230_v26 = vand.u32 4294901760, %v4656_v30  ;;  %v6232_v30 = vand.u32 4294901760, %v4704_v52  ;;  %v1336_v52 = vld [vmem:[%s6058_s3 + $0x160] sm:$0xff] }
 0x1d9   :  { %3807 = vmatpush3.msra.mxu1 %v4685_v45  ;;  %3727 = vmatprep.subr.mxu0 %v5048_v22  ;;  %v1354_v45 = vld [vmem:[%s6058_s3 + $0x1f0] sm:$0xff] }
 0x1da   :  { %3808 = vmatprep.subr.mxu1 %v4693_v47  ;;  %3728 = vmatpush3.msra.mxu0 %v5054_v28  ;;  %v6229_v47 = vand.u32 4294901760, %v4652_v27  ;;  %v6231_v27 = vand.u32 4294901760, %v4691_v9  ;;  %v5219_v15 = vand.u32 4294901760, %v1354_v45  ;;  %v1352_v9 = vld [vmem:[%s6058_s3 + $0x1e0] sm:$0xff] }
 0x1db   :  { %3809 = vmatpush3.msra.mxu1 %v4706_v5  ;;  %1862 = vmatmul.mubr.f32.vlgmr.msra.gmra.mxu0 %v5099_v4  ;;  %v5202_v5 = vand.u32 4294901760, %v1339_v21  ;;  %v5229_v4 = vand.u32 4294901760, %v1338_v29 }
 0x1dc   :  { %3767 = vmatprep.subr.mxu0 %v6227_v23  ;;  %3810 = vmatprep.subr.mxu1 %v4716_v55  ;;  %v5211_v55 = vsub.f32 %v1355_v19, %v5185_v25 }
 0x1dd   :  { %3768 = vmatpush3.msra.mxu0 %v6228_v39  ;;  %2136 = vmatprep.mubr.f32.mxu0 %v5096_v32  ;;  %v1364_v32 = vcombine.high %v5090_v14, %v5090_v14  ;;  %v5238_v19 = vsub.f32 %v1339_v21, %v5202_v5  ;;  %v6235_v14 = vand.u32 4294901760, %v4724_v58  ;;  %v6236_v21 = vand.u32 4294901760, %v4737_v61  ;;  %v1335_v58 = vld [vmem:[%s6058_s3 + $0x158] sm:$0xff] }
 0x1de   :  { %3811 = vmatpush3.msra.mxu1 %v4726_v16  ;;  %3769 = vmatprep.subr.mxu0 %v6229_v47  ;;  %v1353_v16 = vld [vmem:[%s6058_s3 + $0x1e8] sm:$0xff]  ;;  %v6130_v23 = vand.u32 4294901760, %v5211_v55  ;;  %v5258_v39 = vsub.f32 %v1354_v45, %v5219_v15  ;;  %v6238_v47 = vand.u32 4294901760, %v4750_v1  ;;  %v5272_v61 = vsub.f32 %v1338_v29, %v5229_v4  ;;  %v1350_v45 = vld [vmem:[%s6058_s3 + $0x1d0] sm:$0xff] }
 0x1df   :  { %3812 = vmatprep.subr.mxu1 %v4739_v20  ;;  %3770 = vmatpush3.msra.mxu0 %v6230_v26  ;;  %v1337_v20 = vld [vmem:[%s6058_s3 + $0x168] sm:$0xff]  ;;  %6234 = vst [vmem:[#allocation11_spill] sm:$0xff] %v5238_v19  ;;  %v5269_v26 = vrot.slane %v1364_v32, %v4701_v51  ;;  %v6129_v1 = vand.u32 4294901760, %v5238_v19  ;;  %v1334_v29 = vld [vmem:[%s6058_s3 + $0x150] sm:$0xff] }
 0x1e0   :  { %3813 = vmatpush3.msra.mxu1 %v4752_v2  ;;  %3771 = vmatprep.subr.mxu0 %v6231_v27  ;;  %v6233_v2 = vand.u32 4294901760, %v4714_v12  ;;  %v1351_v12 = vld [vmem:[%s6058_s3 + $0x1d8] sm:$0xff]  ;;  %6237 = vst [vmem:[#allocation6_spill] sm:$0xff] %v5258_v39  ;;  %6239 = vst [vmem:[#allocation14_spill] sm:$0xff] %v5272_v61  ;;  %v6240_v27 = vand.u32 4294901760, %v4763_v8  ;;  %v5297_v8 = vsub.f32 %v5211_v55, %v6130_v23  ;;  %v1349_v32 = vld [vmem:[%s6058_s3 + $0x1c8] sm:$0xff] }
 0x1e1   :  { %3814 = vmatprep.subr.mxu1 %v4781_v37  ;;  %3772 = vmatpush3.msra.mxu0 %v6232_v30  ;;  %v5240_v37 = vand.u32 4294901760, %v1353_v16  ;;  %v5286_v51 = vand.u32 4294901760, %v1351_v12  ;;  %v6242_v30 = vand.u32 4294901760, %v4771_v62  ;;  %v6131_v62 = vand.u32 4294901760, %v5258_v39 }
 0x1e2   :  { %3815 = vmatpush3.msra.mxu1 %v4796_v53  ;;  %3773 = vmatprep.subr.mxu0 %v6233_v2  ;;  %v5249_v53 = vand.u32 4294901760, %v1337_v20 }
 0x1e3   :  { %3816 = vmatprep.subr.mxu1 %v4815_v18  ;;  %3774 = vmatpush3.msra.mxu0 %v6235_v14  ;;  %v5260_v18 = vand.u32 4294901760, %v1352_v9  ;;  %v5314_v14 = vand.u32 4294901760, %v1350_v45 }
 0x1e4   :  { %3817 = vmatpush3.msra.mxu1 %v4821_v38  ;;  %3775 = vmatprep.subr.mxu0 %v6236_v21  ;;  %v5274_v38 = vand.u32 4294901760, %v1336_v52  ;;  %v6246_v21 = vand.u32 4294901760, %v4813_v42  ;;  %v5339_v42 = vsub.f32 %v5238_v19, %v6129_v1 }
 0x1e5   :  { %3818 = vmatprep.subr.mxu1 %v4823_v40  ;;  %3776 = vmatpush3.msra.mxu0 %v6238_v47  ;;  %v5284_v40 = vsub.f32 %v1353_v16, %v5240_v37  ;;  %v5302_v16 = vand.u32 4294901760, %v1335_v58  ;;  %v5312_v2 = vsub.f32 %v1352_v9, %v5260_v18  ;;  %v5328_v9 = vand.u32 4294901760, %v1334_v29 }
 0x1e6   :  { %3819 = vmatpush3.msra.mxu1 %v4832_v48  ;;  %3777 = vmatprep.subr.mxu0 %v6240_v27  ;;  %v5300_v48 = vsub.f32 %v1337_v20, %v5249_v53  ;;  %v1333_v20 = vld [vmem:[%s6058_s3 + $0x148] sm:$0xff]  ;;  %v5326_v47 = vsub.f32 %v1336_v52, %v5274_v38  ;;  %v1348_v27 = vld [vmem:[%s6058_s3 + $0x1c0] sm:$0xff]  ;;  %v5343_v52 = vsub.f32 %v1351_v12, %v5286_v51 }
 0x1e7   :  { %6241 = vst [vmem:[#allocation7_spill] sm:$0xff] %v5284_v40  ;;  %3820 = vmatprep.subr.mxu1 %v4841_v3  ;;  %3778 = vmatpush3.msra.mxu0 %v6242_v30  ;;  %v6244_v3 = vand.u32 4294901760, %v4794_v11  ;;  %6245 = vst [vmem:[#allocation8_spill] sm:$0xff] %v5312_v2  ;;  %v6132_v11 = vand.u32 4294901760, %v5272_v61  ;;  %v6133_v30 = vand.u32 4294901760, %v5284_v40  ;;  %v5355_v1 = vand.u32 4294901760, %v1333_v20 }
 0x1e8   :  { %6243 = vst [vmem:[#allocation16_spill] sm:$0xff] %v5300_v48  ;;  %3821 = vmatpush3.msra.mxu1 %v4866_v43  ;;  %v1380_v43 = vcombine.high %v5269_v26, %v5269_v26  ;;  %6247 = vst [vmem:[#allocation9_spill] sm:$0xff] %v5326_v47  ;;  %v1332_v12 = vld [vmem:[%s6058_s3 + $0x140] sm:$0xff]  ;;  %v5372_v23 = vand.u32 4294901760, %v1348_v27 }
 0x1e9   :  { %3779 = vmatprep.subr.mxu0 %v6244_v3  ;;  %3822 = vmatprep.subr.mxu1 %v4911_v36  ;;  %v6248_v36 = vand.u32 4294901760, %v4830_v46  ;;  %6249 = vst [vmem:[#allocation10_spill] sm:$0xff] %v5343_v52  ;;  %v5345_v3 = vand.u32 4294901760, %v1349_v32  ;;  %v6254_v46 = vand.u32 4294901760, %v6213_v57  ;;  %v6264_v57 = vand.u32 4294901760, %v6219_v63 }
 0x1ea   :  { %3780 = vmatpush3.msra.mxu0 %v6246_v21  ;;  %3823 = vmatpush3.msra.mxu1 %v4913_v24  ;;  %v6250_v21 = vand.u32 4294901760, %v6209_v17  ;;  %v6134_v24 = vand.u32 4294901760, %v5300_v48  ;;  %v5366_v17 = vsub.f32 %v5258_v39, %v6131_v62  ;;  %v5386_v62 = vsub.f32 %v1334_v29, %v5328_v9 }
 0x1eb   :  { %3781 = vmatprep.subr.mxu0 %v6248_v36  ;;  %3824 = vmatprep.subr.mxu1 %v6208_v7  ;;  %v5353_v36 = vsub.f32 %v1335_v58, %v5302_v16  ;;  %v6252_v7 = vand.u32 4294901760, %v6211_v31  ;;  %v5370_v58 = vsub.f32 %v1350_v45, %v5314_v14  ;;  %v5382_v31 = vsub.f32 %v5272_v61, %v6132_v11  ;;  %v6257_v45 = vld [vmem:[#allocation17_spill] sm:$0xff] }
 0x1ec   :  { %3782 = vmatpush3.msra.mxu0 %v6250_v21  ;;  %3825 = vmatpush3.msra.mxu1 %v6210_v59  ;;  %v5377_v59 = vand.u32 4294901760, %v1380_v43  ;;  %6256 = vst [vmem:[#allocation20_spill] sm:$0xff] %v5386_v62  ;;  %v6258_v21 = vand.u32 4294901760, %v6215_v6  ;;  %v5400_v11 = vand.u32 4294901760, %v1332_v12  ;;  %v6261_v29 = vand.u32 4294901760, %v6217_v10 }
 0x1ed   :  { %6251 = vst [vmem:[#allocation12_spill] sm:$0xff] %v5353_v36  ;;  %3783 = vmatprep.subr.mxu0 %v6252_v7  ;;  %6253 = vst [vmem:[#allocation13_spill] sm:$0xff] %v5370_v58  ;;  %3826 = vmatprep.subr.mxu1 %v6212_v13  ;;  %v5394_v13 = vsub.f32 %v5284_v40, %v6133_v30  ;;  %v6260_v7 = vld [vmem:[#allocation19_spill] sm:$0xff]  ;;  %v2364_v6 = vand.u32 4294901760, %v5339_v42  ;;  %v5413_v30 = vsub.f32 %v1333_v20, %v5355_v1 }
 0x1ee   :  { %3784 = vmatpush3.msra.mxu0 %v6254_v46  ;;  %6255 = vst [vmem:[#allocation18_spill] sm:$0xff] %v5377_v59  ;;  %3827 = vmatpush3.msra.mxu1 %v6257_v45  ;;  %v5398_v46 = vsub.f32 %v1349_v32, %v5345_v3  ;;  %v6263_v32 = vld [vmem:[#allocation22_spill] sm:$0xff]  ;;  %v2483_v10 = vand.u32 4294901760, %v5366_v17  ;;  %v1347_v20 = vld [vmem:[%s6058_s3 + $0x1b8] sm:$0xff]  ;;  %v6268_v63 = vand.u32 4294901760, %v6220_v49  ;;  %v2371_v17 = vand.u32 4294901760, %v5382_v31 }
 0x1ef   :  { %3785 = vmatprep.subr.mxu0 %v6258_v21  ;;  %3828 = vmatprep.subr.mxu1 %v6260_v7  ;;  %v5409_v21 = vsub.f32 %v5300_v48, %v6134_v24  ;;  %6262 = vst [vmem:[#allocation23_spill] sm:$0xff] %v5413_v30  ;;  %v6265_v7 = vand.u32 4294901760, %v5312_v2  ;;  %v5426_v24 = vsub.f32 %v1348_v27, %v5372_v23  ;;  %v1331_v45 = vld [vmem:[%s6058_s3 + $0x138] sm:$0xff]  ;;  %v2490_v31 = vand.u32 4294901760, %v5394_v13  ;;  %v1342_v48 = vld [vmem:[%s6058_s3 + $0x190] sm:$0xff] }
 0x1f0   :  { %6259 = vst [vmem:[#allocation21_spill] sm:$0xff] %v5398_v46  ;;  %3786 = vmatpush3.msra.mxu0 %v6261_v29  ;;  %3829 = vmatpush3.msra.mxu1 %v6263_v32  ;;  %v6267_v32 = vld [vmem:[#allocation24_spill] sm:$0xff]  ;;  %v5441_v29 = vsub.f32 %v1380_v43, %v5377_v59  ;;  %v6270_v49 = vld [vmem:[#allocation15_spill] sm:$0xff]  ;;  %v5458_v27 = vsub.f32 %v1332_v12, %v5400_v11  ;;  %v5473_v12 = vand.u32 4294901760, %v1347_v20 }
 0x1f1   :  { %3787 = vmatprep.subr.mxu0 %v6264_v57  ;;  %v5422_v42 = vsub.f32 %v5312_v2, %v6265_v7  ;;  %6266 = vst [vmem:[#allocation17_spill] sm:$0xff] %v5426_v24  ;;  %3830 = vmatprep.subr.mxu1 %v6267_v32  ;;  %v6269_v57 = vand.u32 4294901760, %v5326_v47  ;;  %v6271_v32 = vand.u32 4294901760, %v6270_v49  ;;  %v2378_v13 = vand.u32 4294901760, %v5409_v21  ;;  %v1330_v43 = vld [vmem:[%s6058_s3 + $0x130] sm:$0xff] }
 0x1f2   :  { %3788 = vmatpush3.msra.mxu0 %v6268_v63  ;;  %3831 = vmatpush3.msra.mxu1 %v5029_v44  ;;  %v6272_v63 = vand.u32 4294901760, %v5343_v52  ;;  %6273 = vst [vmem:[#allocation19_spill] sm:$0xff] %v5458_v27  ;;  %v6274_v44 = vand.u32 4294901760, %v6222_v54  ;;  %v6275_v49 = vand.u32 4294901760, %v5353_v36  ;;  %v6277_v21 = vand.u32 4294901760, %v5370_v58 }
 0x1f3   :  { %v5438_v7 = vsub.f32 %v5326_v47, %v6269_v57  ;;  %3789 = vmatprep.subr.mxu0 %v6271_v32  ;;  %v1346_v47 = vld [vmem:[%s6058_s3 + $0x1b0] sm:$0xff]  ;;  %3832 = vmatprep.subr.mxu1 %v5036_v60  ;;  %v6276_v60 = vand.u32 4294901760, %v6223_v33  ;;  %v2497_v54 = vand.u32 4294901760, %v5422_v42  ;;  %v6281_v2 = vand.u32 4294901760, %v6225_v0 }
 0x1f4   :  { %v5454_v57 = vsub.f32 %v5343_v52, %v6272_v63  ;;  %3790 = vmatpush3.msra.mxu0 %v6274_v44  ;;  %v5470_v32 = vsub.f32 %v5353_v36, %v6275_v49  ;;  %3833 = vmatpush3.msra.mxu1 %v5044_v41  ;;  %v5485_v44 = vsub.f32 %v5370_v58, %v6277_v21  ;;  %v5488_v63 = vand.u32 4294901760, %v1331_v45  ;;  %v1345_v36 = vld [vmem:[%s6058_s3 + $0x1a8] sm:$0xff] }
 0x1f5   :  { %3791 = vmatprep.subr.mxu0 %v6276_v60  ;;  %v6278_v52 = vld [vmem:[#allocation25_spill] sm:$0xff]  ;;  %v6279_v41 = vand.u32 4294901760, %v5297_v8  ;;  %v2385_v33 = vand.u32 4294901760, %v5438_v7  ;;  %v6280_v60 = vand.u32 4294901760, %v5386_v62  ;;  %v5503_v49 = vand.u32 4294901760, %v1346_v47 }
 0x1f6   :  { %2242 = vmatmul.mubr.f32.vlgmr.msra.gmra.mxu1 %v6278_v52  ;;  %v1329_v58 = vld [vmem:[%s6058_s3 + $0x128] sm:$0xff]  ;;  %3792 = vmatpush3.msra.mxu0 %v6281_v2  ;;  %v2504_v8 = vand.u32 4294901760, %v5454_v57  ;;  %v6282_v7 = vand.u32 4294901760, %v5398_v46  ;;  %v5517_v42 = vand.u32 4294901760, %v1330_v43  ;;  %v6283_v0 = vand.u32 4294901760, %v6226_v34 }
 0x1f7   :  { %3872 = vmatprep.subr.mxu1 %v6279_v41  ;;  %v5501_v21 = vsub.f32 %v5386_v62, %v6280_v60  ;;  %v1344_v62 = vld [vmem:[%s6058_s3 + $0x1a0] sm:$0xff]  ;;  %2584 = vmatprep.mubr.f32.mxu1 %v5377_v59  ;;  %v2392_v2 = vand.u32 4294901760, %v5470_v32  ;;  %v5534_v60 = vand.u32 4294901760, %v1345_v36  ;;  %v6287_v34 = vand.u32 4294901760, %v4994_v56 }
 0x1f8   :  { %3873 = vmatpush3.msra.mxu1 %v2364_v6  ;;  %v5514_v41 = vsub.f32 %v5398_v46, %v6282_v7  ;;  %3793 = vmatprep.subr.mxu0 %v6283_v0  ;;  %v6284_v6 = vand.u32 4294901760, %v5413_v30  ;;  %v5532_v7 = vsub.f32 %v1347_v20, %v5473_v12  ;;  %v1328_v46 = vld [vmem:[%s6058_s3 + $0x120] sm:$0xff]  ;;  %v2511_v32 = vand.u32 4294901760, %v5485_v44 }
 0x1f9   :  { %6286 = vst [vmem:[#allocation24_spill] sm:$0xff] %v5534_v60  ;;  %3874 = vmatprep.subr.mxu1 %v2483_v10  ;;  %3794 = vmatpush3.msra.mxu0 %v6287_v34  ;;  %v6288_v0 = vand.u32 4294901760, %v5426_v24  ;;  %v5548_v20 = vsub.f32 %v1331_v45, %v5488_v63  ;;  %v5550_v59 = vand.u32 4294901760, %v1329_v58  ;;  %v6290_v56 = vand.u32 4294901760, %v5039_v50 }
 0x1fa   :  { %v5529_v57 = vsub.f32 %v5413_v30, %v6284_v6  ;;  %6285 = vst [vmem:[#allocation22_spill] sm:$0xff] %v5532_v7  ;;  %v1343_v30 = vld [vmem:[%s6058_s3 + $0x198] sm:$0xff]  ;;  %3875 = vmatpush3.msra.mxu1 %v2371_v17  ;;  %v6291_v10 = vand.u32 4294901760, %v5441_v29  ;;  %v2399_v34 = vand.u32 4294901760, %v5501_v21  ;;  %v5564_v45 = vand.u32 4294901760, %v1344_v62 }
 0x1fb   :  { %v5545_v6 = vsub.f32 %v5426_v24, %v6288_v0  ;;  %6289 = vst [vmem:[#allocation15_spill] sm:$0xff] %v5548_v20  ;;  %3795 = vmatprep.subr.mxu0 %v6290_v56  ;;  %v5562_v0 = vsub.f32 %v1346_v47, %v5503_v49  ;;  %v1327_v24 = vld [vmem:[%s6058_s3 + $0x118] sm:$0xff]  ;;  %3876 = vmatprep.subr.mxu1 %v2490_v31  ;;  %v6293_v17 = vand.u32 4294901760, %v5042_v35  ;;  %v2518_v50 = vand.u32 4294901760, %v5514_v41 }
 0x1fc   :  { %v2346_v44 = vsub.f32 %v5441_v29, %v6291_v10  ;;  %v6294_v56 = vand.u32 4294901760, %v5458_v27  ;;  %v5578_v47 = vsub.f32 %v1330_v43, %v5517_v42  ;;  %v5580_v21 = vand.u32 4294901760, %v1328_v46  ;;  %3877 = vmatpush3.msra.mxu1 %v2378_v13  ;;  %v1326_v43 = vld [vmem:[%s6058_s3 + $0x110] sm:$0xff] }
 0x1fd   :  { %6292 = vst [vmem:[#allocation25_spill] sm:$0xff] %v5562_v0  ;;  %3796 = vmatpush3.msra.mxu0 %v6293_v17  ;;  %v6295_v35 = vand.u32 4294901760, %v5048_v22  ;;  %v2406_v31 = vand.u32 4294901760, %v5529_v57  ;;  %v6161_v41 = vand.u32 4294901760, %v5532_v7  ;;  %v5590_v17 = vsub.f32 %v1345_v36, %v5534_v60  ;;  %3878 = vmatprep.subr.mxu1 %v2497_v54  ;;  %v1341_v36 = vld [vmem:[%s6058_s3 + $0x188] sm:$0xff] }
 0x1fe   :  { %v5575_v10 = vsub.f32 %v5458_v27, %v6294_v56  ;;  %v5592_v56 = vand.u32 4294901760, %v1343_v30  ;;  %v6296_v27 = vand.u32 4294901760, %v5054_v28  ;;  %v2525_v22 = vand.u32 4294901760, %v5545_v6  ;;  %3879 = vmatpush3.msra.mxu1 %v2385_v33  ;;  %v1324_v28 = vld [vmem:[%s6058_s3 + $0x100] sm:$0xff] }
 0x1ff   :  { %3797 = vmatprep.subr.mxu0 %v6295_v35  ;;  %v5602_v57 = vsub.f32 %v1329_v58, %v5550_v59  ;;  %v5604_v35 = vand.u32 4294901760, %v1327_v24  ;;  %v2347_v54 = vand.u32 4294901760, %v2346_v44  ;;  %v5614_v6 = vand.u32 4294901760, %v1342_v48  ;;  %v1325_v58 = vld [vmem:[%s6058_s3 + $0x108] sm:$0xff]  ;;  %3880 = vmatprep.subr.mxu1 %v2504_v8 }
 0x200   :  { %3798 = vmatpush3.msra.mxu0 %v6296_v27  ;;  %v5612_v27 = vsub.f32 %v1344_v62, %v5564_v45  ;;  %v2413_v13 = vand.u32 4294901760, %v5575_v10  ;;  %v5625_v44 = vand.u32 4294901760, %v1326_v43  ;;  %v1340_v62 = vld [vmem:[%s6058_s3 + $0x180] sm:$0xff]  ;;  %v2531_v8 = vsub.f32 %v5532_v7, %v6161_v41  ;;  %3881 = vmatpush3.msra.mxu1 %v2392_v2 }
 0x201   :  { %2138 = vmatmul.mubr.f32.vlgmr.msra.gmra.mxu0 %v6278_v52  ;;  %3837 = vmatprep.subr.mxu0 %v5185_v25  ;;  %v5623_v52 = vsub.f32 %v1328_v46, %v5580_v21  ;;  %v5636_v33 = vsub.f32 %v1343_v30, %v5592_v56  ;;  %v5638_v46 = vand.u32 4294901760, %v1341_v36  ;;  %v5649_v10 = vsub.f32 %v1327_v24, %v5604_v35 }
 0x202   :  { %6297 = vst [vmem:[#allocation26_spill] sm:$0xff] %v5625_v44  ;;  %3838 = vmatpush3.msra.mxu0 %v5202_v5  ;;  %2348 = vmatprep.mubr.f32.mxu0 %v2347_v54  ;;  %v6298_v54 = vand.u32 4294901760, %v5548_v20  ;;  %v5651_v30 = vand.u32 4294901760, %v1325_v58  ;;  %v6300_v7 = vand.u32 4294901760, %v5562_v0  ;;  %v5659_v39 = vsub.f32 %v1342_v48, %v5614_v6 }
 0x203   :  { %3839 = vmatprep.subr.mxu0 %v5219_v15  ;;  %3882 = vmatprep.subr.mxu1 %v2511_v32  ;;  %v6301_v24 = vand.u32 4294901760, %v5578_v47  ;;  %v2532_v48 = vand.u32 4294901760, %v2531_v8  ;;  %v6302_v61 = vand.u32 4294901760, %v5590_v17  ;;  %v5679_v19 = vsub.f32 %v1341_v36, %v5638_v46 }
 0x204   :  { %v2419_v40 = vsub.f32 %v5548_v20, %v6298_v54  ;;  %6299 = vst [vmem:[#allocation27_spill] sm:$0xff] %v5651_v30  ;;  %3840 = vmatpush3.msra.mxu0 %v5229_v4  ;;  %v2538_v2 = vsub.f32 %v5562_v0, %v6300_v7  ;;  %v5661_v54 = vand.u32 4294901760, %v1340_v62  ;;  %3883 = vmatpush3.msra.mxu1 %v2399_v34  ;;  %v5671_v7 = vand.u32 4294901760, %v1324_v28 }
 0x205   :  { %3841 = vmatprep.subr.mxu0 %v5240_v37  ;;  %v2426_v32 = vsub.f32 %v5578_v47, %v6301_v24  ;;  %v5669_v20 = vsub.f32 %v1326_v43, %v5625_v44  ;;  %3884 = vmatprep.subr.mxu1 %v2518_v50  ;;  %v2545_v34 = vsub.f32 %v5590_v17, %v6302_v61  ;;  %v6303_v24 = vand.u32 4294901760, %v5602_v57 }
 0x206   :  { %3842 = vmatpush3.msra.mxu0 %v5249_v53  ;;  %3885 = vmatpush3.msra.mxu1 %v2406_v31  ;;  %v2420_v43 = vand.u32 4294901760, %v2419_v40  ;;  %v5687_v8 = vsub.f32 %v1325_v58, %v5651_v30  ;;  %v2539_v61 = vand.u32 4294901760, %v2538_v2  ;;  %v6304_v36 = vand.u32 4294901760, %v5612_v27 }
 0x207   :  { %3843 = vmatprep.subr.mxu0 %v5260_v18  ;;  %v2433_v50 = vsub.f32 %v5602_v57, %v6303_v24  ;;  %3886 = vmatprep.subr.mxu1 %v2525_v22  ;;  %v5695_v40 = vsub.f32 %v1340_v62, %v5661_v54  ;;  %v2427_v24 = vand.u32 4294901760, %v2426_v32  ;;  %v6305_v58 = vand.u32 4294901760, %v5623_v52 }
 0x208   :  { %3844 = vmatpush3.msra.mxu0 %v5274_v38  ;;  %v2552_v31 = vsub.f32 %v5612_v27, %v6304_v36  ;;  %3887 = vmatpush3.msra.mxu1 %v2413_v13  ;;  %v5703_v2 = vsub.f32 %v1324_v28, %v5671_v7  ;;  %v2546_v36 = vand.u32 4294901760, %v2545_v34  ;;  %v6306_v62 = vand.u32 4294901760, %v5636_v33 }
 0x209   :  { %3845 = vmatprep.subr.mxu0 %v5286_v51  ;;  %v2440_v22 = vsub.f32 %v5623_v52, %v6305_v58  ;;  %3888 = vmatprep.subr.mxu1 %v2532_v48  ;;  %v2434_v32 = vand.u32 4294901760, %v2433_v50  ;;  %v6307_v58 = vand.u32 4294901760, %v5649_v10  ;;  %v6308_v34 = vand.u32 4294901760, %v5659_v39 }
 0x20a   :  { %3846 = vmatpush3.msra.mxu0 %v5302_v16  ;;  %v2559_v13 = vsub.f32 %v5636_v33, %v6306_v62  ;;  %3889 = vmatpush3.msra.mxu1 %v2420_v43  ;;  %v2553_v48 = vand.u32 4294901760, %v2552_v31  ;;  %v6309_v50 = vand.u32 4294901760, %v5669_v20  ;;  %v6310_v31 = vand.u32 4294901760, %v5679_v19 }
 0x20b   :  { %3847 = vmatprep.subr.mxu0 %v5314_v14  ;;  %v2447_v41 = vsub.f32 %v5649_v10, %v6307_v58  ;;  %3890 = vmatprep.subr.mxu1 %v2539_v61  ;;  %v2566_v62 = vsub.f32 %v5659_v39, %v6308_v34  ;;  %v2441_v43 = vand.u32 4294901760, %v2440_v22  ;;  %v6311_v22 = vand.u32 4294901760, %v5687_v8 }
 0x20c   :  { %3848 = vmatpush3.msra.mxu0 %v5328_v9  ;;  %3891 = vmatpush3.msra.mxu1 %v2427_v24  ;;  %v2454_v58 = vsub.f32 %v5669_v20, %v6309_v50  ;;  %v2560_v61 = vand.u32 4294901760, %v2559_v13  ;;  %v2573_v34 = vsub.f32 %v5679_v19, %v6310_v31  ;;  %v5738_v28 = vand.u32 4294901760, %v5269_v26 }
 0x20d   :  { %3849 = vmatprep.subr.mxu0 %v5345_v3  ;;  %3892 = vmatprep.subr.mxu1 %v2546_v36  ;;  %v2448_v24 = vand.u32 4294901760, %v2447_v41  ;;  %v2461_v0 = vsub.f32 %v5687_v8, %v6311_v22  ;;  %v2567_v50 = vand.u32 4294901760, %v2566_v62  ;;  %v6312_v36 = vand.u32 4294901760, %v5695_v40 }
 0x20e   :  { %3850 = vmatpush3.msra.mxu0 %v5355_v1  ;;  %3893 = vmatpush3.msra.mxu1 %v2434_v32  ;;  %6313 = vst [vmem:[#allocation28_spill] sm:$0xff] %v5738_v28  ;;  %v2455_v32 = vand.u32 4294901760, %v2454_v58  ;;  %v6314_v41 = vand.u32 4294901760, %v5703_v2 }
 0x20f   :  { %3851 = vmatprep.subr.mxu0 %v5372_v23  ;;  %3894 = vmatprep.subr.mxu1 %v2553_v48  ;;  %v2580_v13 = vsub.f32 %v5695_v40, %v6312_v36  ;;  %v2574_v48 = vand.u32 4294901760, %v2573_v34  ;;  %v2462_v62 = vand.u32 4294901760, %v2461_v0  ;;  %v6318_v36 = vld [vmem:[#allocation14_spill] sm:$0xff] }
 0x210   :  { %3852 = vmatpush3.msra.mxu0 %v5400_v11  ;;  %3895 = vmatpush3.msra.mxu1 %v2441_v43  ;;  %v2468_v31 = vsub.f32 %v5703_v2, %v6314_v41  ;;  %v5749_v43 = vsub.f32 %v5269_v26, %v5738_v28  ;;  %v6315_v26 = vand.u32 4294901760, %v5441_v29  ;;  %v6321_v41 = vld [vmem:[#allocation8_spill] sm:$0xff] }
 0x211   :  { %3853 = vmatprep.subr.mxu0 %v5473_v12  ;;  %3896 = vmatprep.subr.mxu1 %v2560_v61  ;;  %v2581_v22 = vand.u32 4294901760, %v2580_v13  ;;  %v6319_v13 = vld [vmem:[#allocation7_spill] sm:$0xff] }
 0x212   :  { %3854 = vmatpush3.msra.mxu0 %v5488_v63  ;;  %3897 = vmatpush3.msra.mxu1 %v2448_v24  ;;  %v2469_v58 = vand.u32 4294901760, %v2468_v31  ;;  %v6174_v0 = vand.u32 4294901760, %v5749_v43  ;;  %v6316_v24 = vld [vmem:[#allocation11_spill] sm:$0xff]  ;;  %v6323_v31 = vld [vmem:[#allocation10_spill] sm:$0xff] }
 0x213   :  { %3855 = vmatprep.subr.mxu0 %v5503_v49  ;;  %3898 = vmatprep.subr.mxu1 %v2567_v50  ;;  %v6317_v50 = vld [vmem:[#allocation6_spill] sm:$0xff] }
 0x214   :  { %3856 = vmatpush3.msra.mxu0 %v5517_v42  ;;  %3899 = vmatpush3.msra.mxu1 %v2455_v32  ;;  %v2352_v61 = vsub.f32 %v5749_v43, %v6174_v0  ;;  %v6320_v32 = vld [vmem:[#allocation16_spill] sm:$0xff]  ;;  %v6331_v0 = vld [vmem:[#allocation22_spill] sm:$0xff] }
 0x215   :  { %3857 = vmatprep.subr.mxu0 %v5534_v60  ;;  %3900 = vmatprep.subr.mxu1 %v2574_v48  ;;  %v6324_v48 = vld [vmem:[#allocation12_spill] sm:$0xff] }
 0x216   :  { %3858 = vmatpush3.msra.mxu0 %v5550_v59  ;;  %3901 = vmatpush3.msra.mxu1 %v2462_v62  ;;  %v2353_v34 = vand.u32 4294901760, %v2352_v61  ;;  %v6325_v62 = vld [vmem:[#allocation13_spill] sm:$0xff] }
 0x217   :  { %3859 = vmatprep.subr.mxu0 %v5564_v45  ;;  %3902 = vmatprep.subr.mxu1 %v2581_v22  ;;  %v6326_v22 = vld [vmem:[#allocation20_spill] sm:$0xff]  ;;  %v6329_v61 = vld [vmem:[#allocation17_spill] sm:$0xff] }
 0x218   :  { %3860 = vmatpush3.msra.mxu0 %v5580_v21  ;;  %3903 = vmatpush3.msra.mxu1 %v2469_v58  ;;  %v6327_v58 = vld [vmem:[#allocation21_spill] sm:$0xff] }
 0x219   :  { %3861 = vmatprep.subr.mxu0 %v5592_v56  ;;  %2586 = vmatmul.mubr.f32.vlgmr.msra.gmra.mxu1 %v5738_v28  ;;  %v6332_v28 = vld [vmem:[#allocation15_spill] sm:$0xff] }
 0x21a   :  { %3942 = vmatprep.subr.mxu1 %v5185_v25  ;;  %3862 = vmatpush3.msra.mxu0 %v5604_v35 }
 0x21b   :  { %3943 = vmatpush3.msra.mxu1 %v5202_v5  ;;  %2828 = vmatprep.mubr.f32.mxu1 %v6315_v26  ;;  %v6328_v26 = vld [vmem:[#allocation23_spill] sm:$0xff] }
 0x21c   :  { %3863 = vmatprep.subr.mxu0 %v5614_v6  ;;  %3944 = vmatprep.subr.mxu1 %v5219_v15 }
 0x21d   :  { %3864 = vmatpush3.msra.mxu0 %v5625_v44  ;;  %3945 = vmatpush3.msra.mxu1 %v5229_v4 }
 0x21e   :  { %3865 = vmatprep.subr.mxu0 %v5638_v46  ;;  %3946 = vmatprep.subr.mxu1 %v5240_v37 }
 0x21f   :  { %3866 = vmatpush3.msra.mxu0 %v5651_v30  ;;  %3947 = vmatpush3.msra.mxu1 %v5249_v53 }
 0x220   :  { %3867 = vmatprep.subr.mxu0 %v5661_v54  ;;  %3948 = vmatprep.subr.mxu1 %v5260_v18 }
 0x221   :  { %3868 = vmatpush3.msra.mxu0 %v5671_v7  ;;  %3949 = vmatpush3.msra.mxu1 %v5274_v38 }
 0x222   :  { %2354 = vmatmul.mubr.f32.vlgmr.msra.gmra.mxu0 %v2353_v34  ;;  %3907 = vmatprep.subr.mxu0 %v5211_v55  ;;  %v6330_v34 = vld [vmem:[#allocation19_spill] sm:$0xff] }
 0x223   :  { %3950 = vmatprep.subr.mxu1 %v5286_v51  ;;  %3908 = vmatpush3.msra.mxu0 %v6316_v24 }
 0x224   :  { %2721 = vmatprep.mubr.f32.mxu0 %v5441_v29  ;;  %3951 = vmatpush3.msra.mxu1 %v5302_v16  ;;  %v6322_v29 = vld [vmem:[#allocation9_spill] sm:$0xff] }
 0x225   :  { %3909 = vmatprep.subr.mxu0 %v6317_v50  ;;  %3952 = vmatprep.subr.mxu1 %v5314_v14 }
 0x226   :  { %3910 = vmatpush3.msra.mxu0 %v6318_v36  ;;  %3953 = vmatpush3.msra.mxu1 %v5328_v9 }
 0x227   :  { %3911 = vmatprep.subr.mxu0 %v6319_v13  ;;  %3954 = vmatprep.subr.mxu1 %v5345_v3 }
 0x228   :  { %3912 = vmatpush3.msra.mxu0 %v6320_v32  ;;  %3955 = vmatpush3.msra.mxu1 %v5355_v1 }
 0x229   :  { %3913 = vmatprep.subr.mxu0 %v6321_v41  ;;  %3956 = vmatprep.subr.mxu1 %v5372_v23 }
 0x22a   :  { %3914 = vmatpush3.msra.mxu0 %v6322_v29  ;;  %3957 = vmatpush3.msra.mxu1 %v5400_v11 }
 0x22b   :  { %3915 = vmatprep.subr.mxu0 %v6323_v31  ;;  %3958 = vmatprep.subr.mxu1 %v5473_v12 }
 0x22c   :  { %3916 = vmatpush3.msra.mxu0 %v6324_v48  ;;  %3959 = vmatpush3.msra.mxu1 %v5488_v63 }
 0x22d   :  { %3917 = vmatprep.subr.mxu0 %v6325_v62  ;;  %3960 = vmatprep.subr.mxu1 %v5503_v49 }
 0x22e   :  { %3918 = vmatpush3.msra.mxu0 %v6326_v22  ;;  %3961 = vmatpush3.msra.mxu1 %v5517_v42 }
 0x22f   :  { %3919 = vmatprep.subr.mxu0 %v6327_v58  ;;  %3962 = vmatprep.subr.mxu1 %v5534_v60  ;;  %v6333_v60 = vld [vmem:[#allocation25_spill] sm:$0xff] }
 0x230   :  { %3920 = vmatpush3.msra.mxu0 %v6328_v26  ;;  %3963 = vmatpush3.msra.mxu1 %v5550_v59 }
 0x231   :  { %3921 = vmatprep.subr.mxu0 %v6329_v61  ;;  %3964 = vmatprep.subr.mxu1 %v5564_v45 }
 0x232   :  { %3922 = vmatpush3.msra.mxu0 %v6330_v34  ;;  %3965 = vmatpush3.msra.mxu1 %v5580_v21 }
 0x233   :  { %3923 = vmatprep.subr.mxu0 %v6331_v0  ;;  %3966 = vmatprep.subr.mxu1 %v5592_v56 }
 0x234   :  { %3924 = vmatpush3.msra.mxu0 %v6332_v28  ;;  %3967 = vmatpush3.msra.mxu1 %v5604_v35 }
 0x235   :  { %3925 = vmatprep.subr.mxu0 %v6333_v60  ;;  %3968 = vmatprep.subr.mxu1 %v5614_v6 }
 0x236   :  { %3926 = vmatpush3.msra.mxu0 %v5578_v47  ;;  %3969 = vmatpush3.msra.mxu1 %v5625_v44  ;;  %v6334_v44 = vand.u32 4294901760, %v5749_v43 }
 0x237   :  { %3927 = vmatprep.subr.mxu0 %v5590_v17  ;;  %3970 = vmatprep.subr.mxu1 %v5638_v46 }
 0x238   :  { %3928 = vmatpush3.msra.mxu0 %v5602_v57  ;;  %3971 = vmatpush3.msra.mxu1 %v5651_v30  ;;  %v6335_v30 = vld [vmem:[#allocation18_spill] sm:$0xff] }
 0x239   :  { %3929 = vmatprep.subr.mxu0 %v5612_v27  ;;  %3972 = vmatprep.subr.mxu1 %v5661_v54 }
 0x23a   :  { %3930 = vmatpush3.msra.mxu0 %v5623_v52  ;;  %3973 = vmatpush3.msra.mxu1 %v5671_v7 }
 0x23b   :  { %3931 = vmatprep.subr.mxu0 %v5636_v33  ;;  %2832 = vmatmul.mubr.f32.vlgmr.msra.gmra.mxu1 %v6334_v44  ;;  %v6368_v44 = vand.u32 4294901760, %v5669_v20 }
 0x23c   :  { %4012 = vmatprep.subr.mxu1 %v5185_v25  ;;  %3932 = vmatpush3.msra.mxu0 %v5649_v10  ;;  %v6336_v25 = vand.u32 4294901760, %v5211_v55  ;;  %v6340_v55 = vand.u32 4294901760, %v6319_v13 }
 0x23d   :  { %4013 = vmatpush3.msra.mxu1 %v5202_v5  ;;  %3102 = vmatprep.mubr.f32.mxu1 %v6335_v30  ;;  %v6337_v5 = vand.u32 4294901760, %v6316_v24 }
 0x23e   :  { %3933 = vmatprep.subr.mxu0 %v5659_v39  ;;  %4014 = vmatprep.subr.mxu1 %v5219_v15  ;;  %v6338_v15 = vand.u32 4294901760, %v6317_v50 }
 0x23f   :  { %3934 = vmatpush3.msra.mxu0 %v5669_v20  ;;  %4015 = vmatpush3.msra.mxu1 %v5229_v4  ;;  %v6339_v4 = vand.u32 4294901760, %v6318_v36 }
 0x240   :  { %3935 = vmatprep.subr.mxu0 %v5679_v19  ;;  %4016 = vmatprep.subr.mxu1 %v5240_v37  ;;  %v6341_v37 = vand.u32 4294901760, %v6320_v32 }
 0x241   :  { %3936 = vmatpush3.msra.mxu0 %v5687_v8  ;;  %4017 = vmatpush3.msra.mxu1 %v5249_v53  ;;  %v6342_v53 = vand.u32 4294901760, %v6321_v41 }
 0x242   :  { %3937 = vmatprep.subr.mxu0 %v5695_v40  ;;  %4018 = vmatprep.subr.mxu1 %v5260_v18  ;;  %v6343_v18 = vand.u32 4294901760, %v6322_v29 }
 0x243   :  { %3938 = vmatpush3.msra.mxu0 %v5703_v2  ;;  %4019 = vmatpush3.msra.mxu1 %v5274_v38  ;;  %v6344_v38 = vand.u32 4294901760, %v6323_v31 }
 0x244   :  { %2724 = vmatmul.mubr.f32.vlgmr.msra.gmra.mxu0 %v5749_v43  ;;  %3977 = vmatprep.subr.mxu0 %v6336_v25 }
 0x245   :  { %4020 = vmatprep.subr.mxu1 %v5286_v51  ;;  %3978 = vmatpush3.msra.mxu0 %v6337_v5  ;;  %v6345_v51 = vand.u32 4294901760, %v6324_v48 }
 0x246   :  { %2998 = vmatprep.mubr.f32.mxu0 %v6335_v30  ;;  %4021 = vmatpush3.msra.mxu1 %v5302_v16  ;;  %v6348_v16 = vand.u32 4294901760, %v6327_v58 }
 0x247   :  { %3979 = vmatprep.subr.mxu0 %v6338_v15  ;;  %4022 = vmatprep.subr.mxu1 %v5314_v14  ;;  %v6349_v14 = vld [vmem:[#allocation24_spill] sm:$0xff] }
 0x248   :  { %3980 = vmatpush3.msra.mxu0 %v6339_v4  ;;  %4023 = vmatpush3.msra.mxu1 %v5328_v9  ;;  %v6351_v9 = vand.u32 4294901760, %v6329_v61  ;;  %v3625_v4 = vld [vmem:[%s6059_s4] ss:$0 sm:$0xff] }
 0x249   :  { %3981 = vmatprep.subr.mxu0 %v6340_v55  ;;  %4024 = vmatprep.subr.mxu1 %v5345_v3  ;;  %v6352_v3 = vand.u32 4294901760, %v6330_v34 }
 0x24a   :  { %3982 = vmatpush3.msra.mxu0 %v6341_v37  ;;  %4025 = vmatpush3.msra.mxu1 %v5355_v1  ;;  %v6346_v1 = vand.u32 4294901760, %v6325_v62 }
 0x24b   :  { %3983 = vmatprep.subr.mxu0 %v6342_v53  ;;  %4026 = vmatprep.subr.mxu1 %v5372_v23  ;;  %v6347_v23 = vand.u32 4294901760, %v6326_v22 }
 0x24c   :  { %3984 = vmatpush3.msra.mxu0 %v6343_v18  ;;  %4027 = vmatpush3.msra.mxu1 %v5400_v11  ;;  %v6350_v11 = vand.u32 4294901760, %v6328_v26 }
 0x24d   :  { %3985 = vmatprep.subr.mxu0 %v6344_v38  ;;  %4028 = vmatprep.subr.mxu1 %v5473_v12  ;;  %v6354_v12 = vand.u32 4294901760, %v6332_v28  ;;  %v3110_v28 = vld [vmem:[%s6060_s5] sm:$0xff] }
 0x24e   :  { %3986 = vmatpush3.msra.mxu0 %v6345_v51  ;;  %4029 = vmatpush3.msra.mxu1 %v5488_v63  ;;  %v6353_v63 = vand.u32 4294901760, %v6331_v0  ;;  %v5976_v50 = vand.u32 4294901760, %v3110_v28 }
 0x24f   :  { %3987 = vmatprep.subr.mxu0 %v6346_v1  ;;  %4030 = vmatprep.subr.mxu1 %v5503_v49  ;;  %v6356_v49 = vand.u32 4294901760, %v5578_v47  ;;  %v6362_v47 = vand.u32 4294901760, %v5623_v52  ;;  %v6369_v52 = vand.u32 4294901760, %v5679_v19  ;;  %v3112_v19 = vld [vmem:[%s6060_s5 + $0x10] sm:$0xff] }
 0x250   :  { %3988 = vmatpush3.msra.mxu0 %v6347_v23  ;;  %4031 = vmatpush3.msra.mxu1 %v5517_v42  ;;  %v6357_v42 = vld [vmem:[#allocation26_spill] sm:$0xff]  ;;  %v5985_v41 = vsub.f32 %v3110_v28, %v5976_v50 }
 0x251   :  { %3989 = vmatprep.subr.mxu0 %v6348_v16  ;;  %4032 = vmatprep.subr.mxu1 %v6349_v14 }
 0x252   :  { %3990 = vmatpush3.msra.mxu0 %v6350_v11  ;;  %4033 = vmatpush3.msra.mxu1 %v5550_v59  ;;  %v6355_v59 = vand.u32 4294901760, %v6333_v60  ;;  %v6361_v60 = vand.u32 4294901760, %v5612_v27  ;;  %v6367_v27 = vmov 0.0   ;;  %v3252_v48 = vand.u32 4294901760, %v5985_v41 }
 0x253   :  { %3991 = vmatprep.subr.mxu0 %v6351_v9  ;;  %4034 = vmatprep.subr.mxu1 %v5564_v45  ;;  %v6358_v45 = vand.u32 4294901760, %v5590_v17  ;;  %v6363_v17 = vand.u32 4294901760, %v5636_v33  ;;  %v6371_v33 = vand.u32 4294901760, %v5695_v40 }
 0x254   :  { %3992 = vmatpush3.msra.mxu0 %v6352_v3  ;;  %4035 = vmatpush3.msra.mxu1 %v5580_v21  ;;  %v6359_v21 = vand.u32 4294901760, %v5602_v57  ;;  %v6365_v57 = vand.u32 4294901760, %v5649_v10  ;;  %v6372_v10 = vand.u32 4294901760, %v5703_v2  ;;  %v3253_v22 = vsub.f32 %v5985_v41, %v3252_v48 }
 0x255   :  { %3993 = vmatprep.subr.mxu0 %v6353_v63  ;;  %4036 = vmatprep.subr.mxu1 %v5592_v56  ;;  %v6360_v56 = vld [vmem:[#allocation27_spill] sm:$0xff] }
 0x256   :  { %3994 = vmatpush3.msra.mxu0 %v6354_v12  ;;  %4037 = vmatpush3.msra.mxu1 %v5604_v35  ;;  %v6364_v35 = vld [vmem:[#allocation28_spill] sm:$0xff]  ;;  %v3254_v58 = vand.u32 4294901760, %v3253_v22 }
 0x257   :  { %3995 = vmatprep.subr.mxu0 %v6355_v59  ;;  %4038 = vmatprep.subr.mxu1 %v5614_v6  ;;  %v6366_v6 = vand.u32 4294901760, %v5659_v39  ;;  %v3113_v39 = vld [vmem:[%s6060_s5 + $0x18] sm:$0xff] }
 0x258   :  { %3996 = vmatpush3.msra.mxu0 %v6356_v49  ;;  %4039 = vmatpush3.msra.mxu1 %v6357_v42  ;;  %v5943_v20 = vand.u32 4294901760, %v3113_v39 }
 0x259   :  { %3997 = vmatprep.subr.mxu0 %v6358_v45  ;;  %4040 = vmatprep.subr.mxu1 %v5638_v46  ;;  %v6370_v46 = vand.u32 4294901760, %v5687_v8 }
 0x25a   :  { %3998 = vmatpush3.msra.mxu0 %v6359_v21  ;;  %4041 = vmatpush3.msra.mxu1 %v6360_v56  ;;  %v5949_v30 = vsub.f32 %v3113_v39, %v5943_v20 }
 0x25b   :  { %3999 = vmatprep.subr.mxu0 %v6361_v60  ;;  %4042 = vmatprep.subr.mxu1 %v5661_v54  ;;  %v5951_v54 = vand.u32 4294901760, %v3112_v19 }
 0x25c   :  { %4000 = vmatpush3.msra.mxu0 %v6362_v47  ;;  %4043 = vmatpush3.msra.mxu1 %v5671_v7  ;;  %v3111_v7 = vld [vmem:[%s6060_s5 + $0x8] sm:$0xff]  ;;  %v3231_v8 = vand.u32 4294901760, %v5949_v30 }
 0x25d   :  { %4001 = vmatprep.subr.mxu0 %v6363_v17  ;;  %3104 = vmatmul.mubr.f32.vlgmr.msra.gmra.mxu1 %v6364_v35  ;;  %v5960_v40 = vsub.f32 %v3112_v19, %v5951_v54  ;;  %v5962_v2 = vand.u32 4294901760, %v3111_v7 }
 0x25e   :  { %4002 = vmatpush3.msra.mxu0 %v6365_v57  ;;  %4088 = vmatprep.subr.mxu1 %v6367_v27  ;;  %v3232_v43 = vsub.f32 %v5949_v30, %v3231_v8 }
 0x25f   :  { %4003 = vmatprep.subr.mxu0 %v6366_v6  ;;  %v3238_v0 = vand.u32 4294901760, %v5960_v40  ;;  %v5974_v24 = vsub.f32 %v3111_v7, %v5962_v2  ;;  %4096 = vmatprep.mubr.msk.f32.mxu1 %vm4177_vm4, %v6367_v27 }
 0x260   :  { %4004 = vmatpush3.msra.mxu0 %v6368_v44  ;;  %v3233_v36 = vand.u32 4294901760, %v3232_v43 }
 0x261   :  { %4005 = vmatprep.subr.mxu0 %v6369_v52  ;;  %v3239_v13 = vsub.f32 %v5960_v40, %v3238_v0  ;;  %v3245_v32 = vand.u32 4294901760, %v5974_v24 }
 0x262   :  { %4006 = vmatpush3.msra.mxu0 %v6370_v46  ;;  %4089 = vmatpush3.msra.mxu1 %v3233_v36 }
 0x263   :  { %4007 = vmatprep.subr.mxu0 %v6371_v33  ;;  %v3240_v29 = vand.u32 4294901760, %v3239_v13  ;;  %v3246_v31 = vsub.f32 %v5974_v24, %v3245_v32  ;;  %4090 = vmatprep.subr.mxu1 %v6367_v27 }
 0x264   :  { %4008 = vmatpush3.msra.mxu0 %v6372_v10 }
 0x265   :  { %3000 = vmatmul.mubr.f32.vlgmr.msra.gmra.mxu0 %v6364_v35  ;;  %4077 = vmatprep.subr.mxu0 %v6367_v27  ;;  %v3247_v62 = vand.u32 4294901760, %v3246_v31 }
 0x266   :  { %4078 = vmatpush3.msra.mxu0 %v5943_v20  ;;  %4091 = vmatpush3.msra.mxu1 %v3240_v29 }
 0x267   :  { %4079 = vmatprep.subr.mxu0 %v6367_v27  ;;  %4092 = vmatprep.subr.mxu1 %v6367_v27 }
 0x268   :  { %4080 = vmatpush3.msra.mxu0 %v5951_v54  ;;  %4093 = vmatpush3.msra.mxu1 %v3247_v62 }
 0x269   :  { %4081 = vmatprep.subr.mxu0 %v6367_v27  ;;  %4094 = vmatprep.subr.mxu1 %v6367_v27 }
 0x26a   :  { %4082 = vmatpush3.msra.mxu0 %v5962_v2  ;;  %4095 = vmatpush3.msra.mxu1 %v3254_v58 }
 0x26b   :  { %4083 = vmatprep.subr.mxu0 %v6367_v27  ;;  %4085 = vmatprep.mubr.msk.f32.mxu0 %vm4177_vm4, %v6367_v27 }
 0x26c   :  { %4084 = vmatpush3.msra.mxu0 %v5976_v50  ;;  %4110 = vmatprep.subr.mxu1 %v6367_v27 }
 0x26d   :  { %4099 = vmatprep.subr.mxu0 %v6367_v27 }
 0x272   :  { %v3694_v61 = vpop.f32.mrf.mxu1 }
 0x274   :  { %v3695_v15 = vpop.f32.mrf.mxu1 }
 0x275   :  { %v3696_v38 = vadd.f32 %v3695_v15, %v3694_v61 }
 0x27a   :  { %v3659_v26 = vpop.f32.mrf.mxu0 }
 0x27c   :  { %v3660_v34 = vpop.f32.mrf.mxu0 }
 0x27d   :  { %v3661_v5 = vadd.f32 %v3660_v34, %v3659_v26 }
 0x27f   :  { %v1494_v53 = vadd.f32 %v3661_v5, %v3625_v4 }
 0x281   :  { %v1726_v23 = vadd.f32 %v3696_v38, %v1494_v53 }
 0x293   :  { %v3764_v55 = vpop.f32.mrf.mxu1 }
 0x295   :  { %v3765_v1 = vpop.f32.mrf.mxu1 }
 0x296   :  { %v3766_v3 = vadd.f32 %v3765_v1, %v3764_v55 }
 0x29b   :  { %v3729_v25 = vpop.f32.mrf.mxu0 }
 0x29d   :  { %v3730_v37 = vpop.f32.mrf.mxu0 }
 0x29e   :  { %v3731_v51 = vadd.f32 %v3730_v37, %v3729_v25 }
 0x2a0   :  { %v1864_v11 = vadd.f32 %v3731_v51, %v1726_v23 }
 0x2a2   :  { %v1972_v59 = vadd.f32 %v3766_v3, %v1864_v11 }
 0x2b6   :  { %v3834_v16 = vpop.f32.mrf.mxu1 }
 0x2b8   :  { %v3835_v12 = vpop.f32.mrf.mxu1 }
 0x2b9   :  { %v3836_v56 = vadd.f32 %v3835_v12, %v3834_v16 }
 0x2c1   :  { %v3799_v18 = vpop.f32.mrf.mxu0 }
 0x2c3   :  { %v3800_v14 = vpop.f32.mrf.mxu0 }
 0x2c4   :  { %v3801_v63 = vadd.f32 %v3800_v14, %v3799_v18 }
 0x2c6   :  { %v2140_v45 = vadd.f32 %v3801_v63, %v1972_v59 }
 0x2c8   :  { %v2244_v17 = vadd.f32 %v3836_v56, %v2140_v45 }
 0x2d9   :  { %v3904_v49 = vpop.f32.mrf.mxu1 }
 0x2db   :  { %v3905_v47 = vpop.f32.mrf.mxu1 }
 0x2dc   :  { %v3906_v44 = vadd.f32 %v3905_v47, %v3904_v49 }
 0x2e2   :  { %v3869_v9 = vpop.f32.mrf.mxu0 }
 0x2e4   :  { %v3870_v42 = vpop.f32.mrf.mxu0 }
 0x2e5   :  { %v3871_v60 = vadd.f32 %v3870_v42, %v3869_v9 }
 0x2e7   :  { %v2356_v6 = vadd.f32 %v3871_v60, %v2244_v17 }
 0x2e9   :  { %v2588_v33 = vadd.f32 %v3906_v44, %v2356_v6 }
 0x2fb   :  { %v3974_v35 = vpop.f32.mrf.mxu1 }
 0x2fd   :  { %v3975_v46 = vpop.f32.mrf.mxu1 }
 0x2fe   :  { %v3976_v7 = vadd.f32 %v3975_v46, %v3974_v35 }
 0x304   :  { %v3939_v21 = vpop.f32.mrf.mxu0 }
 0x306   :  { %v3940_v57 = vpop.f32.mrf.mxu0 }
 0x307   :  { %v3941_v52 = vadd.f32 %v3940_v57, %v3939_v21 }
 0x309   :  { %v2726_v39 = vadd.f32 %v3941_v52, %v2588_v33 }
 0x30b   :  { %v2834_v36 = vadd.f32 %v3976_v7, %v2726_v39 }
 0x31d   :  { %v4044_v10 = vpop.f32.mrf.mxu1 }
 0x31f   :  { %v4045_v28 = vpop.f32.mrf.mxu1 }
 0x320   :  { %v4046_v29 = vadd.f32 %v4045_v28, %v4044_v10 }
 0x325   :  { %v4009_v19 = vpop.f32.mrf.mxu0 }
 0x327   :  { %v4010_v43 = vpop.f32.mrf.mxu0 }
 0x328   :  { %v4011_v13 = vadd.f32 %v4010_v43, %v4009_v19 }
 0x32a   :  { %v3002_v31 = vadd.f32 %v4011_v13, %v2834_v36 }
 0x32c   :  { %v3106_v62 = vadd.f32 %v4046_v29, %v3002_v31 }
 0x32e   :  { %v3109_v22 = vmax.f32 %v3106_v62, 0.0 }
 0x330   :  { %v3123_v58 = vsel %vm3121_vm5, %v3109_v22, 0 }
 0x331   :  { %v3194_v26 = vand.u32 4294901760, %v3123_v58 }
 0x333   :  { %4097 = vmatmul.mubr.f32.vlgmr.msra.gmra.mxu1 %v3194_v26  ;;  %v3195_v61 = vsub.f32 %v3123_v58, %v3194_v26 }
 0x334   :  { %4111 = vmatpush3.msra.mxu1 %v5943_v20  ;;  %4118 = vmatprep.mubr.msk.f32.mxu1 %vm4177_vm4, %v6367_v27 }
 0x335   :  { %4112 = vmatprep.subr.mxu1 %v6367_v27  ;;  %v3196_v34 = vand.u32 4294901760, %v3195_v61 }
 0x336   :  { %4113 = vmatpush3.msra.mxu1 %v5951_v54 }
 0x337   :  { %4114 = vmatprep.subr.mxu1 %v6367_v27  ;;  %v3197_v25 = vsub.f32 %v3195_v61, %v3196_v34 }
 0x338   :  { %4115 = vmatpush3.msra.mxu1 %v5962_v2 }
 0x339   :  { %4116 = vmatprep.subr.mxu1 %v6367_v27  ;;  %v3198_v5 = vand.u32 4294901760, %v3197_v25 }
 0x33a   :  { %4117 = vmatpush3.msra.mxu1 %v5976_v50 }
 0x33b   :  { %4119 = vmatmul.mubr.f32.vlgmr.msra.gmra.mxu1 %v3196_v34  ;;  %4132 = vmatprep.subr.mxu1 %v6367_v27 }
 0x33c   :  { %4086 = vmatmul.mubr.f32.vlgmr.msra.gmra.mxu0 %v3198_v5  ;;  %4133 = vmatpush3.msra.mxu1 %v5943_v20 }
 0x33d   :  { %4100 = vmatpush3.msra.mxu0 %v5949_v30  ;;  %4134 = vmatprep.subr.mxu1 %v6367_v27 }
 0x33e   :  { %4101 = vmatprep.subr.mxu0 %v6367_v27  ;;  %4135 = vmatpush3.msra.mxu1 %v5951_v54 }
 0x33f   :  { %4102 = vmatpush3.msra.mxu0 %v5960_v40  ;;  %4136 = vmatprep.subr.mxu1 %v6367_v27  ;;  %v3626_v40 = vld [vmem:[%s6061_s6] ss:$0 sm:$0xff] }
 0x340   :  { %4103 = vmatprep.subr.mxu0 %v6367_v27  ;;  %4137 = vmatpush3.msra.mxu1 %v5962_v2 }
 0x341   :  { %4104 = vmatpush3.msra.mxu0 %v5974_v24  ;;  %4138 = vmatprep.subr.mxu1 %v6367_v27 }
 0x342   :  { %4105 = vmatprep.subr.mxu0 %v6367_v27  ;;  %4107 = vmatprep.mubr.msk.f32.mxu0 %vm4177_vm4, %v6367_v27 }
 0x343   :  { %4106 = vmatpush3.msra.mxu0 %v5985_v41  ;;  %4139 = vmatpush3.msra.mxu1 %v5976_v50 }
 0x344   :  { %4140 = vmatprep.mubr.msk.f32.mxu1 %vm4177_vm4, %v6367_v27  ;;  %4108 = vmatmul.mubr.f32.vlgmr.msra.gmra.mxu0 %v3195_v61 }
 0x345   :  { %4121 = vmatprep.subr.mxu0 %v6367_v27  ;;  %4141 = vmatmul.mubr.f32.vlgmr.msra.gmra.mxu1 %v3194_v26 }
 0x346   :  { %4122 = vmatpush3.msra.mxu0 %v3231_v8  ;;  %4129 = vmatprep.mubr.msk.f32.mxu0 %vm4177_vm4, %v6367_v27 }
 0x347   :  { %4123 = vmatprep.subr.mxu0 %v6367_v27 }
 0x348   :  { %4124 = vmatpush3.msra.mxu0 %v3238_v0 }
 0x349   :  { %4125 = vmatprep.subr.mxu0 %v6367_v27 }
 0x34a   :  { %4126 = vmatpush3.msra.mxu0 %v3245_v32 }
 0x34b   :  { %4127 = vmatprep.subr.mxu0 %v6367_v27 }
 0x34c   :  { %4128 = vmatpush3.msra.mxu0 %v3252_v48 }
 0x34d   :  { %4130 = vmatmul.mubr.f32.vlgmr.msra.gmra.mxu0 %v3194_v26 }
 0x3f3   :  { %v3291_v20 = vpop.f32.mrf.mxu1 }
 0x3f5   :  { %v4098_v30 = vpop.f32.mrf.mxu1 }
 0x3fb   :  { %v3448_v54 = vpop.f32.mrf.mxu1 }
 0x3fc   :  { %v3200_v8 = vpop.f32.mrf.mxu0 }
 0x3fd   :  { %v4120_v2 = vpop.f32.mrf.mxu1  ;;  %v3201_v0 = vadd.f32 %v3626_v40, %v3200_v8 }
 0x3fe   :  { %v4087_v50 = vpop.f32.mrf.mxu0 }
 0x3ff   :  { %v3292_v32 = vadd.f32 %v3291_v20, %v3201_v0 }
 0x404   :  { %v3371_v15 = vpop.f32.mrf.mxu0 }
 0x405   :  { %v3606_v24 = vpop.f32.mrf.mxu1  ;;  %v3372_v55 = vadd.f32 %v3371_v15, %v3292_v32 }
 0x406   :  { %v4109_v4 = vpop.f32.mrf.mxu0 }
 0x407   :  { %v4142_v27 = vpop.f32.mrf.mxu1  ;;  %v3449_v41 = vadd.f32 %v3448_v54, %v3372_v55 }
 0x40d   :  { %v3531_v48 = vpop.f32.mrf.mxu0 }
 0x40e   :  { %v3532_v37 = vadd.f32 %v3531_v48, %v3449_v41 }
 0x40f   :  { %v4131_v53 = vpop.f32.mrf.mxu0 }
 0x410   :  { %v3607_v18 = vadd.f32 %v3606_v24, %v3532_v37 }
 0x412   :  { %3610 = vst [vmem:[#allocation3] sm:$0x3] %v3607_v18 }
 0x413   :  { %4162 = shalt.err (!%p4159_p4)
}
 0x414   :  { %3620 = dma.vmem_to_hbm [thread:$0]  %s3618_s27, 32, %s6062_s7, [#allocation4]  }
 0x415   :  { %4171 = dma.done.wait [#allocation4], 32  }
 0x416   :  { %4172 = vsyncadd [#allocation4], 4294967264 }
 0x417   :  { %3624 = vsyncpa [#allocation4], 1 }

</bundles_post_ra>
